<compile_context>
chip_gen: v7x
topology: tpu7x:2x2x1
jax: 0.10.0
libtpu: 0.0.40
codegen_flags: <defaults>
</compile_context>

<pallas_src>
import functools

import jax
import jax.numpy as jnp
import numpy as np
from jax.experimental import pallas as pl
from jax.experimental.pallas import tpu as pltpu


def _feature_cnn_kernel(x_ref, w1_ref, g1_ref, bt1_ref,
                        w2_ref, g2_ref, bt2_ref, out_ref,
                        *, n_batch, l1, l2):
    f32 = jnp.float32
    eps = 1e-5
    p1, p2 = l1 // 2, l2 // 2
    k1 = w1_ref.shape[0]                 # 5 taps
    k2 = w2_ref.shape[0]                 # 3 taps
    c_in = w1_ref.shape[1]
    c1 = w1_ref.shape[2]                 # 64
    c2 = w2_ref.shape[2]                 # 128

    # ---- Conv1d(C_in -> 64, k=5, pad=3): k1 shift-accumulated MXU dots ------
    # Raw padded slab, no im2col; per-tap LHS is (N*l1, C_in).
    x = x_ref[...].astype(f32)                                   # (N, L+6, C_in)
    tap1 = lambda k: x[:, k:k + l1, :].reshape(n_batch * l1, c_in)
    y1 = jnp.dot(tap1(0), w1_ref[0], preferred_element_type=f32)
    for k in range(1, k1):
        y1 = y1 + jnp.dot(tap1(k), w1_ref[k], preferred_element_type=f32)

    # ---- BatchNorm1d(64): train-mode batch stats in ONE pass; fused ReLU ----
    inv_n1 = 1.0 / float(n_batch * l1)
    mean1 = jnp.sum(y1, axis=0, keepdims=True) * inv_n1
    var1 = jnp.sum(y1 * y1, axis=0, keepdims=True) * inv_n1 - mean1 * mean1
    scale1 = g1_ref[...] * jax.lax.rsqrt(var1 + eps)
    shift1 = bt1_ref[...] - mean1 * scale1
    h1 = jnp.maximum(y1 * scale1 + shift1, 0.0)                  # (N*l1, 64)

    # ---- MaxPool1d(2), floor: reshape-to-pairs + max over the pair axis -----
    h1p = h1.reshape(n_batch, l1, c1)[:, :2 * p1, :]
    h1p = jnp.max(h1p.reshape(n_batch * p1, 2, c1), axis=1)
    h1b = h1p.reshape(n_batch, p1, c1)

    # ---- zero pad (pad=2) per batch; Conv1d(64 -> 128, k=3): 3 accumulated dots
    zpad = jnp.zeros((n_batch, 2, c1), f32)
    h1pad = jnp.concatenate([zpad, h1b, zpad], axis=1)           # (N, p1+4, 64)
    tap2 = lambda k: (h1pad[:, k:k + l2, :]
                      .reshape(n_batch * l2, c1).astype(jnp.bfloat16))
    y2 = jnp.dot(tap2(0), w2_ref[0], preferred_element_type=f32)
    for k in range(1, k2):
        y2 = y2 + jnp.dot(tap2(k), w2_ref[k], preferred_element_type=f32)

    # ---- BatchNorm1d(128): single-pass batch stats + ReLU -------------------
    inv_n2 = 1.0 / float(n_batch * l2)
    mean2 = jnp.sum(y2, axis=0, keepdims=True) * inv_n2
    var2 = jnp.sum(y2 * y2, axis=0, keepdims=True) * inv_n2 - mean2 * mean2
    scale2 = g2_ref[...] * jax.lax.rsqrt(var2 + eps)
    shift2 = bt2_ref[...] - mean2 * scale2
    h2 = jnp.maximum(y2 * scale2 + shift2, 0.0)                  # (N*l2, 128)

    # ---- MaxPool1d(2), floor (drops the last position; l2 is odd) -----------
    h2b = h2.reshape(n_batch, l2, c2)[:, :2 * p2, :]
    out_ref[...] = jnp.max(h2b.reshape(n_batch * p2, 2, c2), axis=1)


def _vmem_limit_bytes():
    """Generation-aware VMEM request: 3/4 of physical VMEM, capped (v7x has only 64 MiB/TC)."""
    try:
        cap = int(pltpu.get_tpu_info().vmem_capacity_bytes)
    except Exception:
        return None                       # fall back to the default scoped limit
    return min(3 * cap // 4, 96 * 1024 * 1024)


def feature_cnn_forward(x, params):
    """x: (N, C_in, L) float32 (PyTorch NCL). Returns (N, 128, L_out)."""
    w1, b1, g1, bt1, w2, b2, g2, bt2 = params   # PyTorch layouts: w = (O, I, K)
    del b1, b2    # conv biases cancel exactly under train-mode BatchNorm
    n, c_in, length = x.shape
    l1 = length + 2 * 3 - 5 + 1        # conv1 output length
    p1 = l1 // 2                       # after pool1
    l2 = p1 + 2 * 2 - 3 + 1            # conv2 output length
    p2 = l2 // 2                       # after pool2
    c1, c2 = w1.shape[0], w2.shape[0]  # 64, 128

    # ---- Layout-only glue: NCL -> NLC, zero pad by 3 each side, bf16 transport ----
    # (no im2col expansion: input HBM bytes stay ~1x; transpose kept only to accept
    #  the PyTorch NCL interface — a channel-last consumer could skip it entirely)
    x_pad = jnp.pad(jnp.transpose(x, (0, 2, 1)).astype(jnp.float32),
                    ((0, 0), (3, 3), (0, 0))).astype(jnp.bfloat16)     # (N, L+6, C_in)

    # Tap-major weight repack: w*[k] is the (C_prev, C_out) matrix for tap k.
    w1k = jnp.transpose(w1, (2, 1, 0)).astype(jnp.float32)             # (5, C_in, 64)
    w2k = jnp.transpose(w2, (2, 1, 0)).astype(jnp.bfloat16)            # (3, 64, 128)
    row = lambda v: v.reshape(1, -1).astype(jnp.float32)

    kernel = functools.partial(_feature_cnn_kernel, n_batch=n, l1=l1, l2=l2)
    vmem = pl.BlockSpec(memory_space=pltpu.MemorySpace.VMEM)
    out_flat = pl.pallas_call(
        kernel,
        out_shape=jax.ShapeDtypeStruct((n * p2, c2), jnp.float32),
        in_specs=[vmem] * 7,
        out_specs=vmem,
        compiler_params=pltpu.CompilerParams(vmem_limit_bytes=_vmem_limit_bytes()),
    )(x_pad, w1k, row(g1), row(bt1), w2k, row(g2), row(bt2))
    # Transpose back to PyTorch NCL only to preserve the module interface.
    return jnp.transpose(out_flat.reshape(n, p2, c2), (0, 2, 1))


def reference_forward(x, params):
    """Pure-JAX reference matching the PyTorch module in train() mode (f32)."""
    w1, b1, g1, bt1, w2, b2, g2, bt2 = params
    eps = 1e-5

    def conv(y, w, b, pad):
        out = jax.lax.conv_general_dilated(
            y, w, window_strides=(1,), padding=[(pad, pad)],
            dimension_numbers=("NCH", "OIH", "NCH"))
        return out + b[None, :, None]

    def bn(y, g, b):
        m = jnp.mean(y, axis=(0, 2), keepdims=True)
        v = jnp.mean((y - m) ** 2, axis=(0, 2), keepdims=True)
        return (y - m) / jnp.sqrt(v + eps) * g[None, :, None] + b[None, :, None]

    def pool(y):
        h = y.shape[2] // 2
        return jnp.maximum(y[:, :, 0:2 * h:2], y[:, :, 1:2 * h:2])

    y = pool(jnp.maximum(bn(conv(x, w1, b1, 3), g1, bt1), 0.0))
    y = pool(jnp.maximum(bn(conv(y, w2, b2, 2), g2, bt2), 0.0))
    return y


if __name__ == "__main__":
    key = jax.random.PRNGKey(0)
    ks = jax.random.split(key, 9)
    N, C_IN, L = 2, 4, 16

    x = jax.random.normal(ks[0], (N, C_IN, L), jnp.float32)
    # Deterministic synthetic parameters (shapes from FeatureCNN.__init__).
    w1 = 0.2 * jax.random.normal(ks[1], (64, C_IN, 5), jnp.float32)
    b1 = 0.1 * jax.random.normal(ks[2], (64,), jnp.float32)
    g1 = 1.0 + 0.1 * jax.random.normal(ks[3], (64,), jnp.float32)
    bt1 = 0.1 * jax.random.normal(ks[4], (64,), jnp.float32)
    w2 = 0.1 * jax.random.normal(ks[5], (128, 64, 3), jnp.float32)
    b2 = 0.1 * jax.random.normal(ks[6], (128,), jnp.float32)
    g2 = 1.0 + 0.1 * jax.random.normal(ks[7], (128,), jnp.float32)
    bt2 = 0.1 * jax.random.normal(ks[8], (128,), jnp.float32)
    params = (w1, b1, g1, bt1, w2, b2, g2, bt2)

    out = feature_cnn_forward(x, params)
    out = jax.block_until_ready(out)

    assert out.shape == (N, 128, 5), out.shape
    ref = jax.block_until_ready(reference_forward(x, params))
    # bf16 input transport / bf16 conv2 MXU operands (f32 accumulation) vs. the
    # all-f32 reference -> relaxed tolerance.
    np.testing.assert_allclose(np.asarray(out), np.asarray(ref),
                               rtol=2e-2, atol=2e-2)
    print("KERNEL_OK")
</pallas_src>

<mosaic_0001>
module attributes {stable_mosaic.version = 11 : i64} {
  func.func @_feature_cnn_kernel(%arg0: memref<2x22x4xbf16, #tpu.memory_space<vmem>>, %arg1: memref<5x4x64xf32, #tpu.memory_space<vmem>>, %arg2: memref<1x64xf32, #tpu.memory_space<vmem>>, %arg3: memref<1x64xf32, #tpu.memory_space<vmem>>, %arg4: memref<3x64x128xbf16, #tpu.memory_space<vmem>>, %arg5: memref<1x128xf32, #tpu.memory_space<vmem>>, %arg6: memref<1x128xf32, #tpu.memory_space<vmem>>, %arg7: memref<10x128xf32, #tpu.memory_space<vmem>>) attributes {dimension_semantics = [], scalar_prefetch = 0 : i64, scratch_operands = 0 : i64, tpu.core_type = #tpu.core_type<tc>} {
    %c0 = arith.constant 0 : index
    %c0_0 = arith.constant 0 : index
    %c0_1 = arith.constant 0 : index
    %0 = vector.load %arg0[%c0, %c0_0, %c0_1] : memref<2x22x4xbf16, #tpu.memory_space<vmem>>, vector<2x22x4xbf16>
    %1 = arith.extf %0 : vector<2x22x4xbf16> to vector<2x22x4xf32>
    %2 = vector.extract_strided_slice %1 {offsets = [0, 0, 0], sizes = [2, 18, 4], strides = [1, 1, 1]} : vector<2x22x4xf32> to vector<2x18x4xf32>
    %3 = vector.shape_cast %2 : vector<2x18x4xf32> to vector<36x4xf32>
    %c0_2 = arith.constant 0 : index
    %c0_3 = arith.constant 0 : index
    %c0_4 = arith.constant 0 : index
    %4 = vector.load %arg1[%c0_2, %c0_3, %c0_4] : memref<5x4x64xf32, #tpu.memory_space<vmem>>, vector<1x4x64xf32>
    %5 = vector.shape_cast %4 : vector<1x4x64xf32> to vector<4x64xf32>
    %cst = arith.constant dense<0.000000e+00> : vector<36x64xf32>
    %6 = tpu.matmul %3, %5, %cst {dimension_numbers = #tpu.dot_dimension_numbers<[1], [0], [0], [1], [0, 0, 1, 1], [], []>} : vector<36x4xf32>, vector<4x64xf32>, vector<36x64xf32> -> vector<36x64xf32>
    %7 = vector.extract_strided_slice %1 {offsets = [0, 1, 0], sizes = [2, 18, 4], strides = [1, 1, 1]} : vector<2x22x4xf32> to vector<2x18x4xf32>
    %8 = vector.shape_cast %7 : vector<2x18x4xf32> to vector<36x4xf32>
    %c1 = arith.constant 1 : index
    %c0_5 = arith.constant 0 : index
    %c0_6 = arith.constant 0 : index
    %9 = vector.load %arg1[%c1, %c0_5, %c0_6] : memref<5x4x64xf32, #tpu.memory_space<vmem>>, vector<1x4x64xf32>
    %10 = vector.shape_cast %9 : vector<1x4x64xf32> to vector<4x64xf32>
    %cst_7 = arith.constant dense<0.000000e+00> : vector<36x64xf32>
    %11 = tpu.matmul %8, %10, %cst_7 {dimension_numbers = #tpu.dot_dimension_numbers<[1], [0], [0], [1], [0, 0, 1, 1], [], []>} : vector<36x4xf32>, vector<4x64xf32>, vector<36x64xf32> -> vector<36x64xf32>
    %12 = arith.addf %6, %11 : vector<36x64xf32>
    %13 = vector.extract_strided_slice %1 {offsets = [0, 2, 0], sizes = [2, 18, 4], strides = [1, 1, 1]} : vector<2x22x4xf32> to vector<2x18x4xf32>
    %14 = vector.shape_cast %13 : vector<2x18x4xf32> to vector<36x4xf32>
    %c2 = arith.constant 2 : index
    %c0_8 = arith.constant 0 : index
    %c0_9 = arith.constant 0 : index
    %15 = vector.load %arg1[%c2, %c0_8, %c0_9] : memref<5x4x64xf32, #tpu.memory_space<vmem>>, vector<1x4x64xf32>
    %16 = vector.shape_cast %15 : vector<1x4x64xf32> to vector<4x64xf32>
    %cst_10 = arith.constant dense<0.000000e+00> : vector<36x64xf32>
    %17 = tpu.matmul %14, %16, %cst_10 {dimension_numbers = #tpu.dot_dimension_numbers<[1], [0], [0], [1], [0, 0, 1, 1], [], []>} : vector<36x4xf32>, vector<4x64xf32>, vector<36x64xf32> -> vector<36x64xf32>
    %18 = arith.addf %12, %17 : vector<36x64xf32>
    %19 = vector.extract_strided_slice %1 {offsets = [0, 3, 0], sizes = [2, 18, 4], strides = [1, 1, 1]} : vector<2x22x4xf32> to vector<2x18x4xf32>
    %20 = vector.shape_cast %19 : vector<2x18x4xf32> to vector<36x4xf32>
    %c3 = arith.constant 3 : index
    %c0_11 = arith.constant 0 : index
    %c0_12 = arith.constant 0 : index
    %21 = vector.load %arg1[%c3, %c0_11, %c0_12] : memref<5x4x64xf32, #tpu.memory_space<vmem>>, vector<1x4x64xf32>
    %22 = vector.shape_cast %21 : vector<1x4x64xf32> to vector<4x64xf32>
    %cst_13 = arith.constant dense<0.000000e+00> : vector<36x64xf32>
    %23 = tpu.matmul %20, %22, %cst_13 {dimension_numbers = #tpu.dot_dimension_numbers<[1], [0], [0], [1], [0, 0, 1, 1], [], []>} : vector<36x4xf32>, vector<4x64xf32>, vector<36x64xf32> -> vector<36x64xf32>
    %24 = arith.addf %18, %23 : vector<36x64xf32>
    %25 = vector.extract_strided_slice %1 {offsets = [0, 4, 0], sizes = [2, 18, 4], strides = [1, 1, 1]} : vector<2x22x4xf32> to vector<2x18x4xf32>
    %26 = vector.shape_cast %25 : vector<2x18x4xf32> to vector<36x4xf32>
    %c4 = arith.constant 4 : index
    %c0_14 = arith.constant 0 : index
    %c0_15 = arith.constant 0 : index
    %27 = vector.load %arg1[%c4, %c0_14, %c0_15] : memref<5x4x64xf32, #tpu.memory_space<vmem>>, vector<1x4x64xf32>
    %28 = vector.shape_cast %27 : vector<1x4x64xf32> to vector<4x64xf32>
    %cst_16 = arith.constant dense<0.000000e+00> : vector<36x64xf32>
    %29 = tpu.matmul %26, %28, %cst_16 {dimension_numbers = #tpu.dot_dimension_numbers<[1], [0], [0], [1], [0, 0, 1, 1], [], []>} : vector<36x4xf32>, vector<4x64xf32>, vector<36x64xf32> -> vector<36x64xf32>
    %30 = arith.addf %24, %29 : vector<36x64xf32>
    %cst_17 = arith.constant dense<0.000000e+00> : vector<64xf32>
    %31 = vector.multi_reduction <add>, %30, %cst_17 [0] : vector<36x64xf32> to vector<64xf32>
    %32 = vector.shape_cast %31 : vector<64xf32> to vector<1x64xf32>
    %cst_18 = arith.constant 0.027777778 : f32
    %33 = vector.broadcast %cst_18 : f32 to vector<1x64xf32>
    %34 = arith.mulf %32, %33 : vector<1x64xf32>
    %35 = arith.mulf %30, %30 : vector<36x64xf32>
    %cst_19 = arith.constant dense<0.000000e+00> : vector<64xf32>
    %36 = vector.multi_reduction <add>, %35, %cst_19 [0] : vector<36x64xf32> to vector<64xf32>
    %37 = vector.shape_cast %36 : vector<64xf32> to vector<1x64xf32>
    %cst_20 = arith.constant 0.027777778 : f32
    %38 = vector.broadcast %cst_20 : f32 to vector<1x64xf32>
    %39 = arith.mulf %37, %38 : vector<1x64xf32>
    %40 = arith.mulf %34, %34 : vector<1x64xf32>
    %41 = arith.subf %39, %40 : vector<1x64xf32>
    %c0_21 = arith.constant 0 : index
    %c0_22 = arith.constant 0 : index
    %42 = vector.load %arg2[%c0_21, %c0_22] : memref<1x64xf32, #tpu.memory_space<vmem>>, vector<1x64xf32>
    %cst_23 = arith.constant 9.99999974E-6 : f32
    %43 = vector.broadcast %cst_23 : f32 to vector<1x64xf32>
    %44 = arith.addf %41, %43 : vector<1x64xf32>
    %45 = math.rsqrt %44 : vector<1x64xf32>
    %46 = arith.mulf %42, %45 : vector<1x64xf32>
    %c0_24 = arith.constant 0 : index
    %c0_25 = arith.constant 0 : index
    %47 = vector.load %arg3[%c0_24, %c0_25] : memref<1x64xf32, #tpu.memory_space<vmem>>, vector<1x64xf32>
    %48 = arith.mulf %34, %46 : vector<1x64xf32>
    %49 = arith.subf %47, %48 : vector<1x64xf32>
    %50 = vector.broadcast %46 : vector<1x64xf32> to vector<36x64xf32>
    %51 = arith.mulf %30, %50 : vector<36x64xf32>
    %52 = vector.broadcast %49 : vector<1x64xf32> to vector<36x64xf32>
    %53 = arith.addf %51, %52 : vector<36x64xf32>
    %cst_26 = arith.constant 0.000000e+00 : f32
    %54 = vector.broadcast %cst_26 : f32 to vector<36x64xf32>
    %55 = arith.maximumf %53, %54 : vector<36x64xf32>
    %56 = vector.shape_cast %55 : vector<36x64xf32> to vector<2x18x64xf32>
    %57 = vector.shape_cast %56 : vector<2x18x64xf32> to vector<18x2x64xf32>
    %cst_27 = arith.constant dense<0xFF800000> : vector<18x64xf32>
    %58 = vector.multi_reduction <maximumf>, %57, %cst_27 [1] : vector<18x2x64xf32> to vector<18x64xf32>
    %59 = vector.shape_cast %58 : vector<18x64xf32> to vector<2x9x64xf32>
    %cst_28 = arith.constant 0.000000e+00 : f32
    %60 = vector.broadcast %cst_28 : f32 to vector<2x2x64xf32>
    %61 = tpu.concatenate %60, %59, %60 in 1 : vector<2x2x64xf32>, vector<2x9x64xf32>, vector<2x2x64xf32> -> vector<2x13x64xf32>
    %62 = vector.extract_strided_slice %61 {offsets = [0, 0, 0], sizes = [2, 11, 64], strides = [1, 1, 1]} : vector<2x13x64xf32> to vector<2x11x64xf32>
    %63 = vector.shape_cast %62 : vector<2x11x64xf32> to vector<22x64xf32>
    %64 = arith.truncf %63 : vector<22x64xf32> to vector<22x64xbf16>
    %c0_29 = arith.constant 0 : index
    %c0_30 = arith.constant 0 : index
    %c0_31 = arith.constant 0 : index
    %65 = vector.load %arg4[%c0_29, %c0_30, %c0_31] : memref<3x64x128xbf16, #tpu.memory_space<vmem>>, vector<1x64x128xbf16>
    %66 = vector.shape_cast %65 : vector<1x64x128xbf16> to vector<64x128xbf16>
    %cst_32 = arith.constant dense<0.000000e+00> : vector<22x128xf32>
    %67 = tpu.matmul %64, %66, %cst_32 {dimension_numbers = #tpu.dot_dimension_numbers<[1], [0], [0], [1], [0, 0, 1, 1], [], []>} : vector<22x64xbf16>, vector<64x128xbf16>, vector<22x128xf32> -> vector<22x128xf32>
    %68 = vector.extract_strided_slice %61 {offsets = [0, 1, 0], sizes = [2, 11, 64], strides = [1, 1, 1]} : vector<2x13x64xf32> to vector<2x11x64xf32>
    %69 = vector.shape_cast %68 : vector<2x11x64xf32> to vector<22x64xf32>
    %70 = arith.truncf %69 : vector<22x64xf32> to vector<22x64xbf16>
    %c1_33 = arith.constant 1 : index
    %c0_34 = arith.constant 0 : index
    %c0_35 = arith.constant 0 : index
    %71 = vector.load %arg4[%c1_33, %c0_34, %c0_35] : memref<3x64x128xbf16, #tpu.memory_space<vmem>>, vector<1x64x128xbf16>
    %72 = vector.shape_cast %71 : vector<1x64x128xbf16> to vector<64x128xbf16>
    %cst_36 = arith.constant dense<0.000000e+00> : vector<22x128xf32>
    %73 = tpu.matmul %70, %72, %cst_36 {dimension_numbers = #tpu.dot_dimension_numbers<[1], [0], [0], [1], [0, 0, 1, 1], [], []>} : vector<22x64xbf16>, vector<64x128xbf16>, vector<22x128xf32> -> vector<22x128xf32>
    %74 = arith.addf %67, %73 : vector<22x128xf32>
    %75 = vector.extract_strided_slice %61 {offsets = [0, 2, 0], sizes = [2, 11, 64], strides = [1, 1, 1]} : vector<2x13x64xf32> to vector<2x11x64xf32>
    %76 = vector.shape_cast %75 : vector<2x11x64xf32> to vector<22x64xf32>
    %77 = arith.truncf %76 : vector<22x64xf32> to vector<22x64xbf16>
    %c2_37 = arith.constant 2 : index
    %c0_38 = arith.constant 0 : index
    %c0_39 = arith.constant 0 : index
    %78 = vector.load %arg4[%c2_37, %c0_38, %c0_39] : memref<3x64x128xbf16, #tpu.memory_space<vmem>>, vector<1x64x128xbf16>
    %79 = vector.shape_cast %78 : vector<1x64x128xbf16> to vector<64x128xbf16>
    %cst_40 = arith.constant dense<0.000000e+00> : vector<22x128xf32>
    %80 = tpu.matmul %77, %79, %cst_40 {dimension_numbers = #tpu.dot_dimension_numbers<[1], [0], [0], [1], [0, 0, 1, 1], [], []>} : vector<22x64xbf16>, vector<64x128xbf16>, vector<22x128xf32> -> vector<22x128xf32>
    %81 = arith.addf %74, %80 : vector<22x128xf32>
    %cst_41 = arith.constant dense<0.000000e+00> : vector<128xf32>
    %82 = vector.multi_reduction <add>, %81, %cst_41 [0] : vector<22x128xf32> to vector<128xf32>
    %83 = vector.shape_cast %82 : vector<128xf32> to vector<1x128xf32>
    %cst_42 = arith.constant 0.0454545468 : f32
    %84 = vector.broadcast %cst_42 : f32 to vector<1x128xf32>
    %85 = arith.mulf %83, %84 : vector<1x128xf32>
    %86 = arith.mulf %81, %81 : vector<22x128xf32>
    %cst_43 = arith.constant dense<0.000000e+00> : vector<128xf32>
    %87 = vector.multi_reduction <add>, %86, %cst_43 [0] : vector<22x128xf32> to vector<128xf32>
    %88 = vector.shape_cast %87 : vector<128xf32> to vector<1x128xf32>
    %cst_44 = arith.constant 0.0454545468 : f32
    %89 = vector.broadcast %cst_44 : f32 to vector<1x128xf32>
    %90 = arith.mulf %88, %89 : vector<1x128xf32>
    %91 = arith.mulf %85, %85 : vector<1x128xf32>
    %92 = arith.subf %90, %91 : vector<1x128xf32>
    %c0_45 = arith.constant 0 : index
    %c0_46 = arith.constant 0 : index
    %93 = vector.load %arg5[%c0_45, %c0_46] : memref<1x128xf32, #tpu.memory_space<vmem>>, vector<1x128xf32>
    %cst_47 = arith.constant 9.99999974E-6 : f32
    %94 = vector.broadcast %cst_47 : f32 to vector<1x128xf32>
    %95 = arith.addf %92, %94 : vector<1x128xf32>
    %96 = math.rsqrt %95 : vector<1x128xf32>
    %97 = arith.mulf %93, %96 : vector<1x128xf32>
    %c0_48 = arith.constant 0 : index
    %c0_49 = arith.constant 0 : index
    %98 = vector.load %arg6[%c0_48, %c0_49] : memref<1x128xf32, #tpu.memory_space<vmem>>, vector<1x128xf32>
    %99 = arith.mulf %85, %97 : vector<1x128xf32>
    %100 = arith.subf %98, %99 : vector<1x128xf32>
    %101 = vector.broadcast %97 : vector<1x128xf32> to vector<22x128xf32>
    %102 = arith.mulf %81, %101 : vector<22x128xf32>
    %103 = vector.broadcast %100 : vector<1x128xf32> to vector<22x128xf32>
    %104 = arith.addf %102, %103 : vector<22x128xf32>
    %cst_50 = arith.constant 0.000000e+00 : f32
    %105 = vector.broadcast %cst_50 : f32 to vector<22x128xf32>
    %106 = arith.maximumf %104, %105 : vector<22x128xf32>
    %107 = vector.shape_cast %106 : vector<22x128xf32> to vector<2x11x128xf32>
    %108 = vector.extract_strided_slice %107 {offsets = [0, 0, 0], sizes = [2, 10, 128], strides = [1, 1, 1]} : vector<2x11x128xf32> to vector<2x10x128xf32>
    %109 = vector.shape_cast %108 : vector<2x10x128xf32> to vector<10x2x128xf32>
    %cst_51 = arith.constant dense<0xFF800000> : vector<10x128xf32>
    %110 = vector.multi_reduction <maximumf>, %109, %cst_51 [1] : vector<10x2x128xf32> to vector<10x128xf32>
    %c0_52 = arith.constant 0 : index
    %c0_53 = arith.constant 0 : index
    %111 = vector.load %arg7[%c0_52, %c0_53] : memref<10x128xf32, #tpu.memory_space<vmem>>, vector<10x128xf32>
    tpu.vector_store %arg7[%c0_52, %c0_53], %110 {strides = array<i32>} : memref<10x128xf32, #tpu.memory_space<vmem>>, vector<10x128xf32>,
    return
  }
}

</mosaic_0001>

<bundles_post_ra>
// kernel: tpu_custom_call.1
= control target key start
LH: loop header
LB: loop body
LE: loop exit
PB: predicated region body
PF: predicated region fallthrough
CT: control target
= control target key end

     0   :  { %12 = vsyncpa [#allocation3], 0  ;;  %s3907_s0 = inlined_call_operand.vmem [shape: bf16[2,22,4], index: 0, kind: input, shape index: {}]   ;;  %s3908_s1 = inlined_call_operand.vmem [shape: f32[5,4,64], index: 1, kind: input, shape index: {}]   ;;  %s3909_s2 = inlined_call_operand.vmem [shape: f32[1,64], index: 2, kind: input, shape index: {}]   ;;  %s3910_s3 = inlined_call_operand.vmem [shape: f32[1,64], index: 3, kind: input, shape index: {}]   ;;  %s3911_s4 = inlined_call_operand.hbm [shape: bf16[3,64,128], index: 4, kind: input, shape index: {}]   ;;  %s3912_s5 = inlined_call_operand.vmem [shape: f32[1,128], index: 5, kind: input, shape index: {}]   ;;  %s3913_s6 = inlined_call_operand.vmem [shape: f32[1,128], index: 6, kind: input, shape index: {}]   ;;  %s3914_s7 = inlined_call_operand.hbm [shape: f32[10,128], index: 7, kind: output, shape index: {}]  }
   0x1   :  { %13 = vsyncpa [#allocation4], 0  ;;  %s3077_s24 = smov [#allocation2]   ;;  %s3029_s28 = scalar_lea.hbm %s3911_s4, 1536 }
   0x2   :  { %s27_s25 = sshll.u32 %s3077_s24, 4  ;;  %p3030_p0 = scmp.ne.s32.totalorder %s3911_s4, %s3029_s28  ;;  %s28_s25 = int_to_ptr.vmem [resolvable:$true] %s27_s25 }
   0x3   :  { %p3033_p1 = scmp.lt.u32.totalorder %s3029_s28, %s3911_s4 }
   0x5   :  { %p3035_p2 = pnand %p3033_p1, %p3030_p0 }
   0x7   :  { %3038 = shalt.err (!%p3035_p2)
}
   0x8   :  { %s3039_s10 = scalar_lea.vmem %s28_s25, 1536  ;;  %p3044_p4 = scmp.lt.s32.totalorder %s28_s25, %s28_s25 }
   0x9   :  { %p3040_p3 = scmp.ne.s32.totalorder %s28_s25, %s3039_s10  ;;  %p3045_p5 = scmp.lt.s32.totalorder %s3039_s10, %s3039_s10 }
   0xb   :  { %p3046_p6 = por %p3045_p5, %p3044_p4 }
   0xd   :  { %p3047_p7 = pnand %p3046_p6, %p3040_p3 }
   0xf   :  { %3050 = shalt.err (!%p3047_p7)
}
  0x10   :  { %s3078_s11 = smov 64   ;;  %s3079_s12 = smov 4  }
  0x11   :  { %33 = dma.hbm_to_vmem [thread:$0]  %s3911_s4, 1536, %s28_s25, [#allocation3], %s3078_s11, %s3078_s11, %s3079_s12  }
  0x12   :  { %3073 = dma.done.wait [#allocation3], 1536  }
  0x13   :  { %3074 = vsyncadd [#allocation3], 4294965760  ;;  %v64_v0 = vlaneseq  ;;  %v3080_v1 = vmov 0.0   ;;  %vm3081_vm0 = vmmov 0   ;;  %v3082_v2 = vmov 1983009808  }
  0x14   :  { %2834 = vmatprep.subr.mxu0 %v3080_v1  ;;  %2836 = vmatprep.mubr.msk.f32.mxu0 %vm3081_vm0, %v3080_v1  ;;  %v62_v3 = vunpack.c.l.s4 %v3082_v2  ;;  %vm145_vm1 = vcmask 1040384   ;;  %vm146_vm2 = vcmask 1042434   ;;  %vm297_vm3 = vcmask 1043456   ;;  %v2721_v7 = vld [vmem:[%s3908_s1 + $0x4] sm:$0xf]  ;;  %v45_v20 = vld [vmem:[%s3907_s0 + $0xc] sm:$0xff]  }
  0x15   :  { %v3142_v4 = vshrl.u32 %v64_v0, 7  ;;  %2955 = vmatprep.subr.mxu1 %v3080_v1  ;;  %2839 = vmatprep.mubr.msk.f32.mxu1 %vm3081_vm0, %v3080_v1  ;;  %vm147_vm4 = vmor %vm145_vm1, %vm146_vm2  ;;  %vm148_vm5 = vcmask 1044484   ;;  %v2783_v8 = vld [vmem:[%s3907_s0] sm:$0xff]   ;;  %vm150_vm7 = vcmask 1046534   ;;  %v44_v14 = vld [vmem:[%s3907_s0 + $0x8] sm:$0x7]  ;;  %v51_v32 = vunpack.c.l.bf16 %v45_v20 }
  0x16   :  { %v63_v5 = vunpack.c.0.s8 %v62_v3  ;;  %2835 = vmatpush3.msk.msra.mxu0 %vm297_vm3, %v2721_v7  ;;  %v2784_v9 = vunpack.c.l.bf16 %v2783_v8  ;;  %v2785_v10 = vunpack.c.h.bf16 %v2783_v8  ;;  %2956 = vmatpush3.msk.msra.mxu1 %vm297_vm3, %v2721_v7  ;;  %vm149_vm6 = vmor %vm147_vm4, %vm148_vm5  ;;  %v3179_v25 = vunpack.c.l.bf16 %v44_v14  ;;  %v3237_v60 = vld [vmem:[%s3908_s1] sm:$0xf]  ;;  %v47_v0 = vld [vmem:[%s3907_s0 + $0x14] sm:$0x7] }
  0x17   :  { %2851 = vmatprep.subr.mxu0 %v3080_v1  ;;  %2957 = vmatprep.subr.mxu1 %v3080_v1  ;;  %vm3171_vm8 = vmor %vm149_vm6, %vm150_vm7  ;;  %vm286_vm9 = vcmask 31744   ;;  %v52_v46 = vunpack.c.h.bf16 %v45_v20  ;;  %v101_v49 = vcombine.high %v51_v32, %v51_v32  ;;  %vm1102_vm10 = vcmask 523264  }
  0x18   :  { %v3148_v6 = vsub.s32 %v63_v5, %v3142_v4  ;;  %v60_v11 = vcombine.high %v2784_v9, %v2784_v9  ;;  %v77_v21 = vcombine.high %v2785_v10, %v2785_v10  ;;  %vm1110_vm11 = vcmask 519168  }
  0x19   :  { %vm1276_vm12 = vcmask 517120   ;;  %vm1429_vm13 = vcmask 1041409   ;;  %vm1446_vm14 = vcmask 1042432   ;;  %vm1421_vm15 = vcmask 1043459  }
  0x1a   :  { %v67_v12 = vrot.slane %v2784_v9, %v3148_v6  ;;  %v3164_v13 = vrot.slane %v2785_v10, %v3148_v6  ;;  %v74_v15 = vrot.slane %v60_v11, %v3148_v6  ;;  %v3188_v31 = vrot.slane %v77_v21, %v3148_v6 }
  0x1b   :  { %v3206_v42 = vrot.slane %v3179_v25, %v3148_v6  ;;  %v3219_v50 = vrot.slane %v51_v32, %v3148_v6  ;;  %v3257_v10 = vrot.slane %v101_v49, %v3148_v6  ;;  %v118_v21 = vcombine.high %v52_v46, %v52_v46 }
  0x1c   :  { %v75_v16 = vcombine.high %v67_v12, %v67_v12  ;;  %v2719_v18 = vrot.slane %v67_v12, 9  ;;  %v163_v19 = vrot.slane %v3164_v13, 7  ;;  %v76_v22 = vcombine.high %v74_v15, %v74_v15 }
  0x1d   :  { %v157_v24 = vrot.slane %v74_v15, 7  ;;  %v3185_v30 = vcombine.high %v3164_v13, %v3164_v13  ;;  %v3213_v45 = vcombine.high %v3188_v31, %v3188_v31  ;;  %v169_v57 = vrot.slane %v3188_v31, 7 }
  0x1e   :  { %v154_v23 = vrot.slane %v75_v16, 7  ;;  %v160_v29 = vrot.slane %v76_v22, 7  ;;  %v391_v36 = vcombine.low %v67_v12, %v75_v16  ;;  %v392_v38 = vcombine.low %v74_v15, %v76_v22 }
  0x1f   :  { %v159_v28 = vrot.slane %v157_v24, 2  ;;  %v572_v40 = vcombine.low %v75_v16, %v74_v15  ;;  %v573_v41 = vcombine.low %v76_v22, %v3164_v13  ;;  %v589_v48 = vcombine.low %v3185_v30, %v3188_v31 }
  0x20   :  { %v155_v26 = vsel %vm3171_vm8, %v2719_v18, %v154_v23  ;;  %v156_v27 = vrot.slane %v154_v23, 2  ;;  %v162_v35 = vrot.slane %v160_v29, 2  ;;  %v399_v47 = vrot.slane %v391_v36, %v3148_v6 }
  0x21   :  { %v3196_v34 = vsel %vm3171_vm8, %v159_v28, %v160_v29  ;;  %v3223_v52 = vrot.slane %v392_v38, %v3148_v6  ;;  %v165_v53 = vrot.slane %v163_v19, 2  ;;  %v166_v54 = vrot.slane %v3185_v30, 7 }
  0x22   :  { %v3192_v33 = vsel %vm3171_vm8, %v156_v27, %v157_v24  ;;  %v3201_v39 = vsel %vm3171_vm8, %v162_v35, %v163_v19  ;;  %v3227_v55 = vrot.slane %v572_v40, %v3148_v6  ;;  %v3230_v56 = vrot.slane %v573_v41, %v3148_v6  ;;  %v2734_v40 = vld [vmem:[%s3908_s1 + $0x8] sm:$0xf] }
  0x23   :  { %v210_v37 = vcombine.low %v155_v26, %v3192_v33  ;;  %v211_v43 = vcombine.low %v3196_v34, %v3201_v39  ;;  %v172_v58 = vrot.slane %v3213_v45, 7  ;;  %v408_v61 = vcombine.low %v3164_v13, %v3185_v30 }
  0x24   :  { %v590_v62 = vcombine.low %v3213_v45, %v3206_v42  ;;  %v168_v63 = vrot.slane %v166_v54, 2  ;;  %v3248_v2 = vsel %vm3171_vm8, %v165_v53, %v166_v54  ;;  %v171_v3 = vrot.slane %v169_v57, 2 }
  0x25   :  { %v218_v44 = vrot.slane %v210_v37, %v3148_v6  ;;  %v225_v51 = vrot.slane %v211_v43, %v3148_v6  ;;  %v174_v5 = vrot.slane %v172_v58, 2  ;;  %v175_v7 = vrot.slane %v3206_v42, 7 }
  0x26   :  { %v407_v8 = vcombine.low %v399_v47, %v3223_v52  ;;  %v3254_v9 = vrot.slane %v589_v48, %v3148_v6  ;;  %v3261_v11 = vsel %vm3171_vm8, %v168_v63, %v169_v57  ;;  %v588_v12 = vcombine.low %v3227_v55, %v3230_v56 }
  0x27   :  { %v226_v59 = vcombine.low %v218_v44, %v225_v51  ;;  %v3271_v14 = vsel %vm3171_vm8, %v171_v3, %v172_v58  ;;  %v3275_v15 = vsel %vm3171_vm8, %v174_v5, %v175_v7  ;;  %v3277_v16 = vunpack.c.l.bf16 %v47_v0 }
  0x28   :  { %v3281_v18 = vrot.slane %v590_v62, %v3148_v6  ;;  %v227_v19 = vcombine.low %v3248_v2, %v3261_v11  ;;  %v228_v20 = vcombine.low %v3271_v14, %v3275_v15  ;;  %v3288_v22 = vrot.slane %v52_v46, %v3148_v6 }
  0x29   :  { %2837 = vmatmul.mubr.msk.f32.vlgmr.msra.gmra.mrb[0].mxu0 %vm286_vm9, %v226_v59  ;;  %v3292_v23 = vcombine.high %v3219_v50, %v3219_v50  ;;  %v3296_v24 = vcombine.high %v3206_v42, %v3206_v42  ;;  %v177_v26 = vrot.slane %v175_v7, 2  ;;  %v3300_v27 = vcombine.high %v3257_v10, %v3257_v10 }
  0x2a   :  { %2852 = vmatpush3.msk.msra.mxu0 %vm297_vm3, %v3237_v60  ;;  %2853 = vmatprep.mubr.msk.f32.mxu0 %vm3081_vm0, %v3080_v1  ;;  %v235_v28 = vrot.slane %v227_v19, %v3148_v6  ;;  %v242_v29 = vrot.slane %v228_v20, %v3148_v6  ;;  %v2720_v32 = vrot.slane %v3219_v50, 9  ;;  %v2735_v35 = vcombine.high %v3206_v42, %v3219_v50 }
  0x2b   :  { %2868 = vmatprep.subr.mxu0 %v3080_v1  ;;  %v178_v36 = vrot.slane %v3296_v24, 7  ;;  %v182_v37 = vrot.slane %v3292_v23, 7  ;;  %v185_v38 = vrot.slane %v3257_v10, 7  ;;  %v605_v41 = vcombine.low %v3254_v9, %v3281_v18 }
  0x2c   :  { %v243_v43 = vcombine.low %v235_v28, %v242_v29  ;;  %v3316_v44 = vrot.slane %v118_v21, %v3148_v6  ;;  %v188_v46 = vrot.slane %v3300_v27, 7  ;;  %v3321_v47 = vcombine.high %v3288_v22, %v3288_v22 }
  0x2d   :  { %v3327_v48 = vsel %vm3171_vm8, %v177_v26, %v178_v36  ;;  %v183_v49 = vsel %vm3171_vm8, %v2720_v32, %v182_v37  ;;  %v184_v51 = vrot.slane %v182_v37, 2  ;;  %v607_v53 = vcombine.low %v3257_v10, %v3300_v27 }
  0x2e   :  { %2840 = vmatmul.mubr.msk.f32.vlgmr.msra.gmra.mrb[0].mxu1 %vm286_vm9, %v243_v43  ;;  %v187_v54 = vrot.slane %v185_v38, 2  ;;  %v244_v57 = vcombine.low %v3327_v48, %v183_v49  ;;  %v3338_v58 = vrot.slane %v3277_v16, %v3148_v6  ;;  %v190_v62 = vrot.slane %v188_v46, 2 }
  0x2f   :  { %v3345_v59 = vsel %vm3171_vm8, %v184_v51, %v185_v38  ;;  %v191_v63 = vrot.slane %v3288_v22, 7  ;;  %v194_v0 = vrot.slane %v3321_v47, 7  ;;  %v614_v3 = vrot.slane %v2735_v35, %v3148_v6  ;;  %2842 = vmatprep.mubr.msk.f32.mxu1 %vm3081_vm0, %v3080_v1  ;;  %2958 = vmatpush3.msk.msra.mxu1 %vm297_vm3, %v3237_v60  ;;  %v2742_v60 = vld [vmem:[%s3908_s1 + $0xc] sm:$0xf] }
  0x30   :  { %v3353_v5 = vcombine.high %v3316_v44, %v3316_v44  ;;  %v3359_v7 = vsel %vm3171_vm8, %v187_v54, %v188_v46  ;;  %v252_v20 = vrot.slane %v244_v57, %v3148_v6  ;;  %v621_v28 = vrot.slane %v607_v53, %v3148_v6 }
  0x31   :  { %2854 = vmatmul.mubr.msk.f32.vlgmr.msra.gmra.mrb[0].mxu0 %vm286_vm9, %v407_v8  ;;  %v197_v8 = vrot.slane %v3316_v44, 7  ;;  %v245_v19 = vcombine.low %v3345_v59, %v3359_v7  ;;  %v3367_v21 = vsel %vm3171_vm8, %v190_v62, %v191_v63  ;;  %v193_v26 = vrot.slane %v191_v63, 2 }
  0x32   :  { %2869 = vmatpush3.msk.msra.mxu0 %vm297_vm3, %v2734_v40  ;;  %2870 = vmatprep.mubr.msk.f32.mxu0 %vm3081_vm0, %v3080_v1  ;;  %v196_v29 = vrot.slane %v194_v0, 2  ;;  %v200_v35 = vrot.slane %v3353_v5, 7  ;;  %v3376_v38 = vcombine.high %v3338_v58, %v3338_v58  ;;  %v203_v43 = vrot.slane %v3338_v58, 7 }
  0x33   :  { %2885 = vmatprep.subr.mxu0 %v3080_v1  ;;  %v199_v32 = vrot.slane %v197_v8, 2  ;;  %v259_v37 = vrot.slane %v245_v19, %v3148_v6  ;;  %v3380_v40 = vsel %vm3171_vm8, %v193_v26, %v194_v0  ;;  %v623_v0 = vcombine.low %v3288_v22, %v3321_v47 }
  0x34   :  { %v3388_v46 = vsel %vm3171_vm8, %v196_v29, %v197_v8  ;;  %v261_v51 = vcombine.low %v3367_v21, %v3380_v40  ;;  %v202_v53 = vrot.slane %v200_v35, 2  ;;  %v205_v62 = vrot.slane %v203_v43, 2 }
  0x35   :  { %v3392_v49 = vsel %vm3171_vm8, %v199_v32, %v200_v35  ;;  %v260_v54 = vcombine.low %v252_v20, %v259_v37  ;;  %v206_v63 = vrot.slane %v3376_v38, 7  ;;  %v624_v8 = vcombine.low %v3316_v44, %v3353_v5 }
  0x36   :  { %v262_v57 = vcombine.low %v3388_v46, %v3392_v49  ;;  %v269_v19 = vrot.slane %v261_v51, %v3148_v6  ;;  %v3410_v20 = vsel %vm3171_vm8, %v202_v53, %v203_v43  ;;  %v409_v55 = vcombine.low %v3188_v31, %v3213_v45 }
  0x37   :  { %2843 = vmatmul.mubr.msk.f32.gmra.mrb[2].mxu1 %vm286_vm9, %v260_v54  ;;  %v756_v31 = vcombine.high %v3179_v25, %v3179_v25  ;;  %v622_v45 = vcombine.low %v614_v3, %v621_v28  ;;  %v631_v32 = vrot.slane %v623_v0, %v3148_v6  ;;  %v638_v35 = vrot.slane %v624_v8, %v3148_v6  ;;  %v2749_v0 = vld [vmem:[%s3908_s1 + $0x10] sm:$0xf] }
  0x38   :  { %v276_v56 = vrot.slane %v262_v57, %v3148_v6  ;;  %2845 = vmatprep.mubr.msk.f32.mxu1 %vm3081_vm0, %v3080_v1  ;;  %v3442_v37 = vrot.slane %v408_v61, %v3148_v6  ;;  %v3447_v25 = vrot.slane %v409_v55, %v3148_v6  ;;  %v426_v13 = vcombine.low %v3292_v23, %v3257_v10 }
  0x39   :  { %2871 = vmatmul.mubr.msk.f32.vlgmr.msra.gmra.mrb[0].mxu0 %vm286_vm9, %v588_v12  ;;  %v3422_v12 = vsel %vm3171_vm8, %v205_v62, %v206_v63  ;;  %v3450_v9 = vrot.slane %v756_v31, %v3148_v6  ;;  %v780_v30 = vcombine.low %v3192_v33, %v3196_v34  ;;  %v781_v61 = vcombine.low %v3201_v39, %v3248_v2 }
  0x3a   :  { %2886 = vmatpush3.msk.msra.mxu0 %vm297_vm3, %v2742_v60  ;;  %2873 = vmatprep.mubr.msk.f32.mxu0 %vm3081_vm0, %v3080_v1  ;;  %v278_v26 = vcombine.low %v3410_v20, %v3422_v12  ;;  %v277_v29 = vcombine.low %v269_v19, %v276_v56  ;;  %v639_v3 = vcombine.low %v631_v32, %v638_v35  ;;  %v772_v23 = vrot.slane %v178_v36, 2 }
  0x3b   :  { %2902 = vmatprep.subr.mxu0 %v3080_v1  ;;  %v640_v28 = vcombine.low %v3338_v58, %v3376_v38  ;;  %v773_v33 = vrot.slane %v3450_v9, 7  ;;  %v440_v39 = vrot.slane %v426_v13, %v3148_v6  ;;  %v442_v2 = vcombine.low %v3300_v27, %v3288_v22  ;;  %v3014_v13 = vld [vmem:[#allocation2 + $0x28] sm:$0xff]  }
  0x3c   :  { %2846 = vmatmul.mubr.msk.f32.gmra.mrb[4].mxu1 %vm286_vm9, %v277_v29  ;;  %v285_v18 = vrot.slane %v278_v26, %v3148_v6  ;;  %v443_v43 = vcombine.low %v3321_v47, %v3316_v44  ;;  %v797_v60 = vcombine.low %v3261_v11, %v3271_v14  ;;  %v798_v36 = vcombine.low %v3275_v15, %v3327_v48 }
  0x3d   :  { %2874 = vmatmul.mubr.msk.f32.gmra.mrb[2].mxu0 %vm286_vm9, %v605_v41  ;;  %v425_v41 = vcombine.low %v3206_v42, %v3219_v50  ;;  %2848 = vmatprep.mubr.msk.f32.mxu1 %vm3081_vm0, %v3080_v1  ;;  %v424_v50 = vcombine.low %v3442_v37, %v3447_v25  ;;  %v788_v51 = vrot.slane %v780_v30, %v3148_v6  ;;  %vm1427_vm1 = vcmask 1047559  }
  0x3e   :  { %2876 = vmatprep.mubr.msk.f32.mxu0 %vm3081_vm0, %v3080_v1  ;;  %v795_v53 = vrot.slane %v781_v61, %v3148_v6  ;;  %v647_v22 = vrot.slane %v640_v28, %v3148_v6  ;;  %v774_v11 = vsel %vm3171_vm8, %v772_v23, %v773_v33  ;;  %v764_v14 = vcombine.high %v3277_v16, %v3277_v16  ;;  %v3015_v61 = vld [vmem:[#allocation2 + $0x30] sm:$0xff]  }
  0x3f   :  { %v433_v34 = vrot.slane %v425_v41, %v3148_v6  ;;  %v450_v27 = vrot.slane %v442_v2, %v3148_v6  ;;  %v457_v44 = vrot.slane %v443_v43, %v3148_v6  ;;  %v805_v47 = vrot.slane %v797_v60, %v3148_v6  ;;  %v3013_v41 = vld [vmem:[#allocation2 + $0x20] sm:$0xff]  }
  0x40   :  { %2849 = vmatmul.mubr.msk.f32.gmra.mrb[6].mxu1 %vm286_vm9, %v285_v18  ;;  %v812_v48 = vrot.slane %v798_v36, %v3148_v6  ;;  %v796_v54 = vcombine.low %v788_v51, %v795_v53  ;;  %v814_v57 = vcombine.low %v774_v11, %v3345_v59  ;;  %v815_v16 = vcombine.low %v3359_v7, %v3367_v21  ;;  %v3584_v60 = vld [vmem:[#allocation2] sm:$0xff]  }
  0x41   :  { %2877 = vmatmul.mubr.msk.f32.gmra.mrb[4].mxu0 %vm286_vm9, %v622_v45  ;;  %2856 = vmatprep.mubr.msk.f32.mxu1 %vm3081_vm0, %v3080_v1  ;;  %v441_v15 = vcombine.low %v433_v34, %v440_v39  ;;  %v771_v62 = vrot.slane %v764_v14, %v3148_v6  ;;  %v458_v8 = vcombine.low %v450_v27, %v457_v44  ;;  %vm2258_vm4 = vcmask 1045504  }
  0x42   :  { %2879 = vmatprep.mubr.msk.f32.mxu0 %vm3081_vm0, %v3080_v1  ;;  %v459_v19 = vcombine.low %v3353_v5, %v3338_v58  ;;  %v813_v55 = vcombine.low %v805_v47, %v812_v48  ;;  %v822_v59 = vrot.slane %v814_v57, %v3148_v6  ;;  %v829_v7 = vrot.slane %v815_v16, %v3148_v6 }
  0x43   :  { %v831_v21 = vcombine.low %v3380_v40, %v3388_v46  ;;  %v832_v56 = vcombine.low %v3392_v49, %v3410_v20  ;;  %v775_v58 = vrot.slane %v206_v63, 2  ;;  %v776_v5 = vrot.slane %v771_v62, 7  ;;  %2919 = vmatprep.subr.bf16.mxu1 %v3013_v41 }
  0x44   :  { %2857 = vmatmul.mubr.msk.f32.vlgmr.msra.gmra.mrb[0].mxu1 %vm286_vm9, %v424_v50  ;;  %v466_v26 = vrot.slane %v459_v19, %v3148_v6  ;;  %v830_v40 = vcombine.low %v822_v59, %v829_v7  ;;  %v967_v45 = vcombine.low %v3206_v42, %v3296_v24  ;;  %v966_v17 = vcombine.low %v3223_v52, %v3442_v37  ;;  %v3016_v50 = vld [vmem:[#allocation2 + $0x38] sm:$0xff]  }
  0x45   :  { %2880 = vmatmul.mubr.msk.f32.gmra.mrb[6].mxu0 %vm286_vm9, %v639_v3  ;;  %2859 = vmatprep.mubr.msk.f32.mxu1 %vm3081_vm0, %v3080_v1  ;;  %v839_v46 = vrot.slane %v831_v21, %v3148_v6  ;;  %v846_v49 = vrot.slane %v832_v56, %v3148_v6  ;;  %v777_v63 = vsel %vm3171_vm8, %v775_v58, %v776_v5 }
  0x46   :  { %2882 = vmatprep.mubr.msk.f32.mxu0 %vm3081_vm0, %v3080_v1  ;;  %v848_v29 = vcombine.low %v3422_v12, %v777_v63  ;;  %v974_v12 = vrot.slane %v967_v45, %v3148_v6  ;;  %v976_v32 = vcombine.low %v3450_v9, %v3257_v10  ;;  %v985_v10 = vcombine.low %v457_v44, %v466_v26 }
  0x47   :  { %v847_v20 = vcombine.low %v839_v46, %v846_v49  ;;  %v986_v35 = vcombine.low %v3376_v38, %v771_v62  ;;  %2920 = vmatpush3.bf16.msra.mxu1 %v3013_v41 }
  0x48   :  { %2860 = vmatmul.mubr.msk.f32.gmra.mrb[2].mxu1 %vm286_vm9, %v441_v15  ;;  %v855_v31 = vrot.slane %v848_v29, %v3148_v6  ;;  %v975_v42 = vcombine.low %v3447_v25, %v974_v12  ;;  %v983_v24 = vrot.slane %v976_v32, %v3148_v6  ;;  %2921 = vmatprep.subr.bf16.mxu1 %v3014_v13 }
  0x49   :  { %2883 = vmatmul.mubr.msk.f32.gmra.mrb[8].mxu0 %vm286_vm9, %v647_v22  ;;  %2862 = vmatprep.mubr.msk.f32.mxu1 %vm3081_vm0, %v3080_v1  ;;  %v993_v37 = vrot.slane %v986_v35, %v3148_v6 }
  0x4a   :  { %2887 = vmatprep.mubr.msk.f32.mxu0 %vm3081_vm0, %v3080_v1  ;;  %v984_v52 = vcombine.low %v983_v24, %v450_v27 }
  0x4b   :  { %2922 = vmatpush3.bf16.msra.mxu1 %v3014_v13 }
  0x4c   :  { %2863 = vmatmul.mubr.msk.f32.gmra.mrb[4].mxu1 %vm286_vm9, %v458_v8  ;;  %2923 = vmatprep.subr.bf16.mxu1 %v3015_v61 }
  0x4d   :  { %2888 = vmatmul.mubr.msk.f32.vlgmr.msra.gmra.mrb[0].mxu0 %vm286_vm9, %v796_v54  ;;  %2865 = vmatprep.mubr.msk.f32.mxu1 %vm3081_vm0, %v3080_v1 }
  0x4e   :  { %2903 = vmatpush3.msk.msra.mxu0 %vm297_vm3, %v2749_v0  ;;  %2890 = vmatprep.mubr.msk.f32.mxu0 %vm3081_vm0, %v3080_v1  ;;  %vm1443_vm3 = vcmask 1041408  }
  0x4f   :  { %2924 = vmatpush3.bf16.msra.mxu1 %v3015_v61 }
  0x50   :  { %2866 = vmatmul.mubr.msk.f32.gmra.mrb[6].mxu1 %vm286_vm9, %v466_v26  ;;  %2925 = vmatprep.subr.bf16.mxu1 %v3016_v50 }
  0x51   :  { %2891 = vmatmul.mubr.msk.f32.gmra.mrb[2].mxu0 %vm286_vm9, %v813_v55 }
  0x52   :  { %2893 = vmatprep.mubr.msk.f32.mxu0 %vm3081_vm0, %v3080_v1 }
  0x53   :  { %2926 = vmatpush3.bf16.msra.mxu1 %v3016_v50 }
  0x54   :  { %2931 = vmatprep.subr.bf16.mxu1 %v3584_v60 }
  0x55   :  { %2894 = vmatmul.mubr.msk.f32.gmra.mrb[4].mxu0 %vm286_vm9, %v830_v40 }
  0x56   :  { %2896 = vmatprep.mubr.msk.f32.mxu0 %vm3081_vm0, %v3080_v1 }
  0x59   :  { %2897 = vmatmul.mubr.msk.f32.gmra.mrb[6].mxu0 %vm286_vm9, %v847_v20 }
  0x5a   :  { %2899 = vmatprep.mubr.msk.f32.mxu0 %vm3081_vm0, %v3080_v1 }
  0x5d   :  { %2900 = vmatmul.mubr.msk.f32.gmra.mrb[8].mxu0 %vm286_vm9, %v855_v31 }
  0x5e   :  { %2904 = vmatprep.mubr.msk.f32.mxu0 %vm3081_vm0, %v3080_v1 }
  0x61   :  { %2905 = vmatmul.mubr.msk.f32.vlgmr.msra.gmra.mrb[0].mxu0 %vm286_vm9, %v966_v17 }
  0x62   :  { %2907 = vmatprep.mubr.msk.f32.mxu0 %vm3081_vm0, %v3080_v1 }
  0x65   :  { %2908 = vmatmul.mubr.msk.f32.gmra.mrb[2].mxu0 %vm286_vm9, %v975_v42 }
  0x66   :  { %2910 = vmatprep.mubr.msk.f32.mxu0 %vm3081_vm0, %v3080_v1 }
  0x69   :  { %2911 = vmatmul.mubr.msk.f32.gmra.mrb[4].mxu0 %vm286_vm9, %v984_v52 }
  0x6a   :  { %2913 = vmatprep.mubr.msk.f32.mxu0 %vm3081_vm0, %v3080_v1 }
  0x6d   :  { %2914 = vmatmul.mubr.msk.f32.gmra.mrb[6].mxu0 %vm286_vm9, %v985_v10 }
  0x6e   :  { %2916 = vmatprep.mubr.msk.f32.mxu0 %vm3081_vm0, %v3080_v1  ;;  %vm1424_vm0 = vcmask 1045509  }
  0x71   :  { %2917 = vmatmul.mubr.msk.f32.gmra.mrb[8].mxu0 %vm286_vm9, %v993_v37 }
 0x117   :  { %v551_v25 = vpop.f32.mrb[0].mxu1 }
 0x118   :  { %v2858_v9 = vpop.f32.mrb[1].mxu1 }
 0x11b   :  { %v556_v18 = vpop.f32.mrb[2].mxu1 }
 0x11c   :  { %v2861_v30 = vpop.f32.mrb[3].mxu1 }
 0x11d   :  { %v1143_v30 = vld [vmem:[%s3909_s2] sm:$0x1] }
 0x11f   :  { %v561_v38 = vpop.f32.mrb[4].mxu1 }
 0x120   :  { %v2864_v3 = vpop.f32.mrb[5].mxu1 }
 0x123   :  { %v566_v28 = vpop.f32.mrb[6].mxu1 }
 0x124   :  { %v2867_v23 = vpop.f32.mrb[7].mxu1 }
 0x134   :  { %v3578_v1 = vpop.f32.mrb[0].mxu0 }
 0x135   :  { %v2906_v33 = vpop.f32.mrb[1].mxu0  ;;  %v1120_v39 = vmul.f32 %v3578_v1, %v3578_v1  ;;  %v1103_v36 = vsel %vm1102_vm10, %v3578_v1, 0.0 }
 0x136   :  { %v3083_v33 = vmov 1966171168  }
 0x137   :  { %v1125_v14 = vsel %vm1102_vm10, %v1120_v39, 0.0 }
 0x138   :  { %v1078_v34 = vpop.f32.mrb[2].mxu0 }
 0x139   :  { %v3582_v2 = vadd.f32 %v1078_v34, %v551_v25  ;;  %v2909_v43 = vpop.f32.mrb[3].mxu0  ;;  %v1455_v34 = vunpack.c.l.s4 %v3083_v33 }
 0x13b   :  { %v1104_v51 = vsel %vm1102_vm10, %v3582_v2, 0.0  ;;  %v1121_v53 = vmul.f32 %v3582_v2, %v3582_v2 }
 0x13c   :  { %v1105_v22 = vadd.f32 %v1104_v51, %v1103_v36  ;;  %v1083_v11 = vpop.f32.mrb[4].mxu0 }
 0x13d   :  { %v1126_v15 = vsel %vm1102_vm10, %v1121_v53, 0.0  ;;  %v2960_v27 = vadd.f32 %v1083_v11, %v556_v18  ;;  %v2912_v44 = vpop.f32.mrb[5].mxu0 }
 0x13e   :  { %v1127_v47 = vadd.f32 %v1126_v15, %v1125_v14  ;;  %v1456_v14 = vunpack.c.0.s8 %v1455_v34 }
 0x13f   :  { %v1106_v48 = vsel %vm1102_vm10, %v2960_v27, 0.0  ;;  %v1122_v54 = vmul.f32 %v2960_v27, %v2960_v27 }
 0x140   :  { %v1107_v57 = vadd.f32 %v1106_v48, %v1105_v22  ;;  %v1088_v16 = vpop.f32.mrb[6].mxu0 }
 0x141   :  { %v1128_v62 = vsel %vm1102_vm10, %v1122_v54, 0.0  ;;  %v2961_v0 = vadd.f32 %v1088_v16, %v561_v38  ;;  %v2915_v8 = vpop.f32.mrb[7].mxu0  ;;  %v3603_v38 = vsub.s32 0, %v3142_v4 }
 0x142   :  { %v1129_v19 = vadd.f32 %v1128_v62, %v1127_v47 }
 0x143   :  { %v1108_v55 = vsel %vm1102_vm10, %v2961_v0, 0.0  ;;  %v1123_v59 = vmul.f32 %v2961_v0, %v2961_v0 }
 0x144   :  { %v1109_v7 = vadd.f32 %v1108_v55, %v1107_v57  ;;  %v1093_v21 = vpop.f32.mrb[8].mxu0 }
 0x145   :  { %v1130_v56 = vsel %vm1102_vm10, %v1123_v59, 0.0  ;;  %v2962_v58 = vadd.f32 %v1093_v21, %v566_v28  ;;  %v2918_v5 = vpop.f32.mrb[9].mxu0  ;;  %v1147_v28 = vld [vmem:[%s3910_s3] sm:$0x1] }
 0x146   :  { %v1131_v26 = vadd.f32 %v1130_v56, %v1129_v19  ;;  %v3613_v19 = vsub.s32 %v1456_v14, %v3142_v4 }
 0x147   :  { %v1111_v40 = vsel %vm1110_vm11, %v2962_v58, 0.0  ;;  %v1124_v46 = vmul.f32 %v2962_v58, %v2962_v58 }
 0x148   :  { %v1112_v49 = vadd.f32 %v1111_v40, %v1109_v7 }
 0x149   :  { %v1132_v63 = vsel %vm1110_vm11, %v1124_v46, 0.0 }
 0x14a   :  { %v1113_v20 = vrot.slane %v1112_v49, 4  ;;  %v1133_v29 = vadd.f32 %v1132_v63, %v1131_v26 }
 0x14c   :  { %v1114_v31 = vadd.f32 %v1113_v20, %v1112_v49  ;;  %v1134_v45 = vrot.slane %v1133_v29, 4 }
 0x14e   :  { %v1115_v17 = vrot.slane %v1114_v31, 2  ;;  %v1135_v12 = vadd.f32 %v1134_v45, %v1133_v29 }
 0x150   :  { %v1116_v32 = vadd.f32 %v1115_v17, %v1114_v31  ;;  %v1136_v42 = vrot.slane %v1135_v12, 2 }
 0x152   :  { %v1117_v24 = vrot.slane %v1116_v32, 1  ;;  %v1137_v52 = vadd.f32 %v1136_v42, %v1135_v12 }
 0x154   :  { %v1118_v10 = vadd.f32 %v1117_v24, %v1116_v32  ;;  %v1138_v35 = vrot.slane %v1137_v52, 1 }
 0x156   :  { %v1119_v37 = vmul.f32 0.027777778, %v1118_v10  ;;  %v1139_v25 = vadd.f32 %v1138_v35, %v1137_v52 }
 0x158   :  { %v1140_v9 = vmul.f32 0.027777778, %v1139_v25  ;;  %v1141_v18 = vmul.f32 %v1119_v37, %v1119_v37 }
 0x15a   :  { %v1142_v41 = vsub.f32 %v1140_v9, %v1141_v18 }
 0x15c   :  { %v1144_v13 = vadd.f32 1e-05, %v1142_v41 }
 0x15e   :  { %3025 = vrsqrt.f32 %v1144_v13 }
 0x168   :  { %v3026_v61 = vpop.eup %3025 }
 0x169   :  { %v1146_v3 = vmul.f32 %v3026_v61, %v1143_v30 }
 0x16b   :  { %v1148_v50 = vmul.f32 %v1146_v3, %v1119_v37  ;;  %v1154_v23 = vrot.slane %v1146_v3, %v3603_v38 }
 0x16d   :  { %v1149_v39 = vsub.f32 %v1147_v28, %v1148_v50  ;;  %v1156_v43 = vmul.f32 %v1154_v23, %v3578_v1  ;;  %v1157_v36 = vmul.f32 %v3582_v2, %v1154_v23  ;;  %v1158_v51 = vmul.f32 %v2960_v27, %v1154_v23 }
 0x16e   :  { %v1159_v53 = vmul.f32 %v2961_v0, %v1154_v23  ;;  %v1160_v22 = vmul.f32 %v2962_v58, %v1154_v23 }
 0x16f   :  { %v1165_v11 = vrot.slane %v1149_v39, %v3603_v38 }
 0x171   :  { %v1167_v15 = vadd.f32 %v1165_v11, %v1156_v43  ;;  %v1168_v44 = vadd.f32 %v1165_v11, %v1157_v36  ;;  %v1169_v47 = vadd.f32 %v1165_v11, %v1158_v51  ;;  %v1170_v48 = vadd.f32 %v1165_v11, %v1159_v53 }
 0x172   :  { %v1171_v54 = vadd.f32 %v1165_v11, %v1160_v22 }
 0x173   :  { %v1172_v57 = vmax.f32 %v1167_v15, 0.0  ;;  %v1173_v16 = vmax.f32 %v1168_v44, 0.0  ;;  %v1174_v62 = vmax.f32 %v1169_v47, 0.0  ;;  %v1175_v8 = vmax.f32 %v1170_v48, 0.0 }
 0x174   :  { %v1176_v1 = vmax.f32 %v1171_v54, 0.0 }
 0x175   :  { %v1182_v2 = vcombine.high %v1172_v57, %v1172_v57  ;;  %v1189_v27 = vrot.slane %v1172_v57, %v3148_v6  ;;  %v1199_v0 = vcombine.high %v1173_v16, %v1173_v16  ;;  %v3617_v55 = vrot.slane %v1173_v16, %v3148_v6 }
 0x176   :  { %v1216_v59 = vcombine.high %v1174_v62, %v1174_v62  ;;  %v1223_v7 = vrot.slane %v1174_v62, %v3148_v6  ;;  %v1233_v21 = vcombine.high %v1175_v8, %v1175_v8  ;;  %v3621_v56 = vrot.slane %v1175_v8, %v3148_v6 }
 0x177   :  { %v1196_v58 = vrot.slane %v1182_v2, %v3148_v6  ;;  %v1197_v4 = vcombine.high %v1189_v27, %v1189_v27  ;;  %v1213_v5 = vrot.slane %v1199_v0, %v3148_v6  ;;  %v1214_v26 = vcombine.high %v3617_v55, %v3617_v55 }
 0x178   :  { %v1230_v40 = vrot.slane %v1216_v59, %v3148_v6  ;;  %v1231_v46 = vcombine.high %v1223_v7, %v1223_v7  ;;  %v3629_v49 = vrot.slane %v1233_v21, %v3148_v6  ;;  %v1248_v63 = vcombine.high %v3621_v56, %v3621_v56 }
 0x179   :  { %v1198_v20 = vcombine.high %v1196_v58, %v1196_v58  ;;  %v1215_v29 = vcombine.high %v1213_v5, %v1213_v5  ;;  %v3634_v31 = vrot.slane %v1176_v1, %v3148_v6  ;;  %v1277_v45 = vsel %vm1276_vm12, %v1189_v27, -inf }
 0x17a   :  { %v1232_v17 = vcombine.high %v1230_v40, %v1230_v40  ;;  %v1249_v12 = vcombine.high %v3629_v49, %v3629_v49  ;;  %v1278_v32 = vrot.slane %v1277_v45, 4  ;;  %v1284_v42 = vsel %vm1276_vm12, %v1197_v4, -inf }
 0x17b   :  { %v1257_v24 = vcombine.high %v3634_v31, %v3634_v31  ;;  %v1285_v52 = vrot.slane %v1284_v42, 4  ;;  %v1291_v10 = vsel %vm1276_vm12, %v1196_v58, -inf  ;;  %v1298_v35 = vsel %vm1276_vm12, %v1198_v20, -inf }
 0x17c   :  { %v1279_v37 = vmax.f32 %v1277_v45, %v1278_v32  ;;  %v1292_v6 = vrot.slane %v1291_v10, 4  ;;  %v1299_v25 = vrot.slane %v1298_v35, 4  ;;  %v1305_v9 = vsel %vm1276_vm12, %v3617_v55, -inf }
 0x17d   :  { %v1286_v18 = vmax.f32 %v1284_v42, %v1285_v52  ;;  %v1306_v41 = vrot.slane %v1305_v9, 4  ;;  %v1319_v13 = vsel %vm1276_vm12, %v1213_v5, -inf  ;;  %v1326_v30 = vsel %vm1276_vm12, %v1215_v29, -inf }
 0x17e   :  { %v1280_v61 = vrot.slane %v1279_v37, 2  ;;  %v1293_v3 = vmax.f32 %v1291_v10, %v1292_v6  ;;  %v3648_v28 = vmax.f32 %v1298_v35, %v1299_v25  ;;  %v1320_v50 = vrot.slane %v1319_v13, 4 }
 0x17f   :  { %v1287_v23 = vrot.slane %v1286_v18, 2  ;;  %v3650_v33 = vmax.f32 %v1305_v9, %v1306_v41  ;;  %v1327_v34 = vrot.slane %v1326_v30, 4  ;;  %v1333_v39 = vsel %vm1276_vm12, %v1223_v7, -inf }
 0x180   :  { %v1281_v43 = vmax.f32 %v1279_v37, %v1280_v61  ;;  %v1294_v36 = vrot.slane %v1293_v3, 2  ;;  %v1321_v51 = vmax.f32 %v1319_v13, %v1320_v50  ;;  %v1334_v53 = vrot.slane %v1333_v39, 4 }
 0x181   :  { %v1288_v22 = vmax.f32 %v1286_v18, %v1287_v23  ;;  %v1308_v11 = vrot.slane %v3650_v33, 2  ;;  %v1328_v14 = vmax.f32 %v1326_v30, %v1327_v34  ;;  %v1340_v15 = vsel %vm1276_vm12, %v1231_v46, -inf }
 0x182   :  { %v1282_v44 = vrot.slane %v1281_v43, 1  ;;  %v1295_v47 = vmax.f32 %v1293_v3, %v1294_v36  ;;  %v1322_v48 = vrot.slane %v1321_v51, 2  ;;  %v1335_v54 = vmax.f32 %v1333_v39, %v1334_v53 }
 0x183   :  { %v1289_v57 = vrot.slane %v1288_v22, 1  ;;  %v1329_v16 = vrot.slane %v1328_v14, 2  ;;  %v1341_v62 = vrot.slane %v1340_v15, 4  ;;  %v1347_v8 = vsel %vm1276_vm12, %v1230_v40, -inf }
 0x184   :  { %v3656_v1 = vmax.f32 %v1281_v43, %v1282_v44  ;;  %v1323_v2 = vmax.f32 %v1321_v51, %v1322_v48  ;;  %v1336_v27 = vrot.slane %v1335_v54, 2  ;;  %v1348_v0 = vrot.slane %v1347_v8, 4 }
 0x185   :  { %v1330_v59 = vmax.f32 %v1328_v14, %v1329_v16  ;;  %v1342_v7 = vmax.f32 %v1340_v15, %v1341_v62  ;;  %v1354_v21 = vsel %vm1276_vm12, %v1232_v17, -inf  ;;  %v1361_v58 = vsel %vm1276_vm12, %v3621_v56, -inf }
 0x186   :  { %v1324_v4 = vrot.slane %v1323_v2, 1  ;;  %v1337_v5 = vmax.f32 %v1335_v54, %v1336_v27  ;;  %v1349_v46 = vmax.f32 %v1347_v8, %v1348_v0  ;;  %v1355_v20 = vrot.slane %v1354_v21, 4 }
 0x187   :  { %v1331_v29 = vrot.slane %v1330_v59, 1  ;;  %v1343_v45 = vrot.slane %v1342_v7, 2  ;;  %v1362_v40 = vrot.slane %v1361_v58, 4  ;;  %v1368_v32 = vsel %vm1276_vm12, %v1248_v63, -inf }
 0x188   :  { %v1325_v42 = vmax.f32 %v1323_v2, %v1324_v4  ;;  %v1338_v52 = vrot.slane %v1337_v5, 1  ;;  %v1350_v10 = vrot.slane %v1349_v46, 2  ;;  %v1356_v35 = vmax.f32 %v1354_v21, %v1355_v20 }
 0x189   :  { %v1332_v37 = vmax.f32 %v1330_v59, %v1331_v29  ;;  %v1344_v6 = vmax.f32 %v1342_v7, %v1343_v45  ;;  %v1363_v25 = vmax.f32 %v1361_v58, %v1362_v40  ;;  %v1369_v17 = vrot.slane %v1368_v32, 4 }
 0x18a   :  { %v1339_v9 = vmax.f32 %v1337_v5, %v1338_v52  ;;  %v1351_v18 = vmax.f32 %v1349_v46, %v1350_v10  ;;  %v1382_v56 = vsel %vm1276_vm12, %v1249_v12, -inf  ;;  %v1389_v41 = vsel %vm1276_vm12, %v3634_v31, -inf }
 0x18b   :  { %v1364_v13 = vrot.slane %v1363_v25, 2  ;;  %v1383_v63 = vrot.slane %v1382_v56, 4  ;;  %v1390_v30 = vrot.slane %v1389_v41, 4  ;;  %v1396_v61 = vsel %vm1276_vm12, %v1257_v24, -inf }
 0x18c   :  { %v1397_v3 = vrot.slane %v1396_v61, 4  ;;  %v1430_v50 = vsel %vm1429_vm13, %v1332_v37, %v1325_v42  ;;  %v1290_v23 = vmax.f32 %v1288_v22, %v1289_v57  ;;  %v1296_v34 = vrot.slane %v1295_v47, 1 }
 0x18d   :  { %v1384_v39 = vmax.f32 %v1382_v56, %v1383_v63  ;;  %v1391_v43 = vmax.f32 %v1389_v41, %v1390_v30  ;;  %v1431_v12 = vsel %vm146_vm2, %v1339_v9, %v1430_v50  ;;  %v1301_v36 = vrot.slane %v3648_v28, 2 }
 0x18e   :  { %v1398_v51 = vmax.f32 %v1396_v61, %v1397_v3  ;;  %v3676_v53 = vsel %vm1446_vm14, %v1431_v12, 0.0  ;;  %v1297_v14 = vmax.f32 %v1295_v47, %v1296_v34  ;;  %v1309_v31 = vmax.f32 %v3650_v33, %v1308_v11 }
 0x18f   :  { %v1385_v24 = vrot.slane %v1384_v39, 2  ;;  %v1392_v15 = vrot.slane %v1391_v43, 2  ;;  %v3681_v22 = vrot.slane %v3676_v53, %v3613_v19  ;;  %v1302_v44 = vmax.f32 %v3648_v28, %v1301_v36 }
 0x190   :  { %v1399_v48 = vrot.slane %v1398_v51, 2  ;;  %v1310_v54 = vrot.slane %v1309_v31, 1  ;;  %v1312_v57 = vsel %vm1276_vm12, %v1214_v26, -inf  ;;  %v1345_v16 = vrot.slane %v1344_v6, 1 }
 0x191   :  { %v1386_v47 = vmax.f32 %v1384_v39, %v1385_v24  ;;  %v1393_v62 = vmax.f32 %v1391_v43, %v1392_v15  ;;  %v1303_v33 = vrot.slane %v1302_v44, 1  ;;  %v1313_v11 = vrot.slane %v1312_v57, 4 }
 0x192   :  { %v1400_v8 = vmax.f32 %v1398_v51, %v1399_v48  ;;  %v1311_v2 = vmax.f32 %v1309_v31, %v1310_v54  ;;  %v1346_v27 = vmax.f32 %v1344_v6, %v1345_v16  ;;  %v1352_v0 = vrot.slane %v1351_v18, 1 }
 0x193   :  { %v1387_v59 = vrot.slane %v1386_v47, 1  ;;  %v1394_v28 = vrot.slane %v1393_v62, 1  ;;  %v1304_v7 = vmax.f32 %v1302_v44, %v1303_v33  ;;  %v1314_v21 = vmax.f32 %v1312_v57, %v1313_v11 }
 0x194   :  { %v1401_v58 = vrot.slane %v1400_v8, 1  ;;  %v1353_v55 = vmax.f32 %v1351_v18, %v1352_v0  ;;  %v1357_v4 = vrot.slane %v1356_v35, 2  ;;  %v1365_v26 = vmax.f32 %v1363_v25, %v1364_v13 }
 0x195   :  { %v1388_v5 = vmax.f32 %v1386_v47, %v1387_v59  ;;  %v1395_v46 = vmax.f32 %v1393_v62, %v1394_v28  ;;  %v1315_v20 = vrot.slane %v1314_v21, 2  ;;  %v1370_v29 = vmax.f32 %v1368_v32, %v1369_v17 }
 0x196   :  { %v1402_v45 = vmax.f32 %v1400_v8, %v1401_v58  ;;  %v1358_v40 = vmax.f32 %v1356_v35, %v1357_v4  ;;  %v1366_v42 = vrot.slane %v1365_v26, 1  ;;  %v1375_v52 = vsel %vm1276_vm12, %v3629_v49, -inf }
 0x197   :  { %v1437_v10 = vsel %vm1429_vm13, %v1395_v46, %v1388_v5  ;;  %v1316_v37 = vmax.f32 %v1314_v21, %v1315_v20  ;;  %v1371_v6 = vrot.slane %v1370_v29, 2  ;;  %v1376_v9 = vrot.slane %v1375_v52, 4 }
 0x198   :  { %v1438_v56 = vsel %vm146_vm2, %v1402_v45, %v1437_v10  ;;  %v1359_v18 = vrot.slane %v1358_v40, 1  ;;  %v1367_v41 = vmax.f32 %v1365_v26, %v1366_v42  ;;  %v1422_v25 = vsel %vm1421_vm15, %v1290_v23, %v3656_v1 }
 0x199   :  { %v3695_v32 = vsel %vm1446_vm14, %v1438_v56, 0.0  ;;  %v1317_v35 = vrot.slane %v1316_v37, 1  ;;  %v1372_v17 = vmax.f32 %v1370_v29, %v1371_v6  ;;  %v1377_v13 = vmax.f32 %v1375_v52, %v1376_v9 }
 0x19a   :  { %v1580_v49 = vrot.slane %v3695_v32, %v3613_v19  ;;  %v1360_v63 = vmax.f32 %v1358_v40, %v1359_v18  ;;  %v1423_v30 = vsel %vm148_vm5, %v1297_v14, %v1422_v25  ;;  %v1432_v61 = vsel %vm1421_vm15, %v1353_v55, %v1346_v27 }
 0x19b   :  { %v1318_v3 = vmax.f32 %v1316_v37, %v1317_v35  ;;  %v1373_v50 = vrot.slane %v1372_v17, 1  ;;  %v1378_v34 = vrot.slane %v1377_v13, 2  ;;  %v1425_v39 = vsel %vm1424_vm0, %v1304_v7, %v1423_v30 }
 0x19c   :  { %v1581_v1 = vcombine.high %v1580_v49, %v1580_v49  ;;  %v3703_v23 = vrot.slane %v1580_v49, %v3613_v19  ;;  %v1426_v43 = vsel %vm150_vm7, %v1311_v2, %v1425_v39  ;;  %v1433_v12 = vsel %vm148_vm5, %v1360_v63, %v1432_v61 }
 0x19d   :  { %v1374_v36 = vmax.f32 %v1372_v17, %v1373_v50  ;;  %v1379_v51 = vmax.f32 %v1377_v13, %v1378_v34  ;;  %v1428_v31 = vsel %vm1427_vm1, %v1318_v3, %v1426_v43  ;;  %v1434_v14 = vsel %vm1424_vm0, %v1367_v41, %v1433_v12 }
 0x19e   :  { %v3710_v24 = vrot.slane %v1581_v1, %v3613_v19  ;;  %v1444_v15 = vsel %vm1443_vm3, 0.0, %v1428_v31  ;;  %v1509_v44 = vcombine.high %v3681_v22, %v3681_v22  ;;  %v3717_v48 = vrot.slane %v3681_v22, %v3613_v19 }
 0x19f   :  { %v1380_v54 = vrot.slane %v1379_v51, 1  ;;  %v1435_v57 = vsel %vm150_vm7, %v1374_v36, %v1434_v14  ;;  %v1453_v16 = vcombine.high %v1444_v15, %v1444_v15  ;;  %v1460_v47 = vrot.slane %v1444_v15, %v3613_v19 }
 0x1a0   :  { %v3722_v62 = vrot.slane %v1509_v44, %v3613_v19  ;;  %v3726_v33 = vcombine.high %v3717_v48, %v3717_v48  ;;  %v1849_v11 = vcombine.low %v3703_v23, %v3710_v24  ;;  %v2760_v22 = vcombine.high %v3703_v23, %v3710_v24 }
 0x1a1   :  { %v1381_v8 = vmax.f32 %v1379_v51, %v1380_v54  ;;  %v1467_v2 = vrot.slane %v1453_v16, %v3613_v19  ;;  %v1468_v27 = vcombine.high %v1460_v47, %v1460_v47  ;;  %v1476_v0 = vrot.slane %v1460_v47, %v3613_v19 }
 0x1a2   :  { %v1748_v59 = vcombine.high %v3722_v62, %v3722_v62  ;;  %v1799_v28 = vcombine.low %v3722_v62, %v3726_v33  ;;  %v3739_v7 = vrot.slane %v1849_v11, %v3613_v19  ;;  %v3742_v21 = vrot.slane %v2760_v22, %v3613_v19 }
 0x1a3   :  { %v1436_v58 = vsel %vm1427_vm1, %v1381_v8, %v1435_v57  ;;  %v1469_v55 = vcombine.high %v1467_v2, %v1467_v2  ;;  %v1483_v4 = vrot.slane %v1467_v2, %v3613_v19  ;;  %v1490_v26 = vrot.slane %v1468_v27, %v3613_v19 }
 0x1a4   :  { %v1445_v5 = vsel %vm1443_vm3, 0.0, %v1436_v58  ;;  %v1498_v46 = vcombine.high %v1476_v0, %v1476_v0  ;;  %v1809_v20 = vrot.slane %v1799_v28, %v3613_v19  ;;  %v1886_v29 = vrot.slane %v3742_v21, %v3613_v19  ;;  %v3018_v21 = vld [vmem:[#allocation2 + $0x8] sm:$0xff]  }
 0x1a5   :  { %v1497_v45 = vrot.slane %v1469_v55, %v3613_v19  ;;  %v1499_v40 = vcombine.high %v1483_v4, %v1483_v4  ;;  %v1500_v42 = vcombine.high %v1490_v26, %v1490_v26  ;;  %v1525_v52 = vcombine.high %v1445_v5, %v1445_v5 }
 0x1a6   :  { %v1532_v10 = vrot.slane %v1445_v5, %v3613_v19  ;;  %v1750_v37 = vcombine.low %v1490_v26, %v1498_v46  ;;  %v1597_v6 = vcombine.low %v1476_v0, %v1490_v26  ;;  %v2756_v9 = vcombine.high %v1476_v0, %v1490_v26 }
 0x1a7   :  { %v1501_v56 = vcombine.high %v1497_v45, %v1497_v45  ;;  %v1539_v18 = vrot.slane %v1525_v52, %v3613_v19  ;;  %v1751_v41 = vcombine.low %v1500_v42, %v1483_v4  ;;  %v1752_v25 = vcombine.low %v1497_v45, %v1499_v40 }
 0x1a8   :  { %v1540_v35 = vcombine.high %v1532_v10, %v1532_v10  ;;  %v1548_v17 = vrot.slane %v1532_v10, %v3613_v19  ;;  %v1760_v13 = vrot.slane %v1750_v37, %v3613_v19  ;;  %v1599_v49 = vcombine.low %v1483_v4, %v1497_v45 }
 0x1a9   :  { %v1541_v63 = vcombine.high %v1539_v18, %v1539_v18  ;;  %v1555_v30 = vrot.slane %v1539_v18, %v3613_v19  ;;  %v1753_v61 = vcombine.low %v1501_v56, %v3717_v48  ;;  %v1767_v3 = vrot.slane %v1751_v41, %v3613_v19 }
 0x1aa   :  { %v1562_v50 = vrot.slane %v1540_v35, %v3613_v19  ;;  %v1774_v34 = vrot.slane %v1752_v25, %v3613_v19  ;;  %v3761_v39 = vcombine.high %v1548_v17, %v1548_v17  ;;  %v2757_v1 = vcombine.high %v1483_v4, %v1497_v45 }
 0x1ab   :  { %v1569_v43 = vrot.slane %v1541_v63, %v3613_v19  ;;  %v1781_v12 = vrot.slane %v1753_v61, %v3613_v19  ;;  %v1782_v36 = vcombine.low %v1760_v13, %v1767_v3  ;;  %v1607_v51 = vrot.slane %v1597_v6, %v3613_v19 }
 0x1ac   :  { %v1800_v31 = vcombine.low %v1748_v59, %v1562_v50  ;;  %v2758_v14 = vcombine.high %v1548_v17, %v1562_v50  ;;  %v1572_v15 = vcombine.high %v1562_v50, %v1562_v50  ;;  %v1614_v44 = vrot.slane %v2756_v9, %v3613_v19 }
 0x1ad   :  { %v1783_v54 = vcombine.low %v1774_v34, %v1781_v12  ;;  %v1790_v57 = vrot.slane %v1782_v36, %v3613_v19  ;;  %v1802_v16 = vcombine.low %v1555_v30, %v1569_v43  ;;  %v2759_v47 = vcombine.high %v1555_v30, %v1569_v43 }
 0x1ae   :  { %v1816_v11 = vrot.slane %v1800_v31, %v3613_v19  ;;  %v1823_v22 = vrot.slane %v2758_v14, %v3613_v19  ;;  %v1621_v8 = vrot.slane %v1599_v49, %v3613_v19  ;;  %v1628_v2 = vrot.slane %v2757_v1, %v3613_v19 }
 0x1af   :  { %v1797_v27 = vrot.slane %v1783_v54, %v3613_v19  ;;  %v1830_v0 = vrot.slane %v1802_v16, %v3613_v19  ;;  %v1857_v59 = vrot.slane %v2759_v47, %v3613_v19  ;;  %v1629_v28 = vcombine.low %v1607_v51, %v1614_v44 }
 0x1b0   :  { %v1831_v58 = vcombine.low %v1809_v20, %v1816_v11  ;;  %v1630_v55 = vcombine.low %v1621_v8, %v1628_v2  ;;  %v1646_v4 = vcombine.low %v3717_v48, %v3722_v62  ;;  %v1647_v26 = vcombine.low %v3726_v33, %v1548_v17 }
 0x1b1   :  { %v1798_v5 = vcombine.low %v1790_v57, %v1797_v27  ;;  %v1832_v46 = vcombine.low %v1823_v22, %v1830_v0  ;;  %v1872_v45 = vcombine.low %v1857_v59, %v3739_v7  ;;  %v1637_v40 = vrot.slane %v1629_v28, %v3613_v19 }
 0x1b2   :  { %v1839_v42 = vrot.slane %v1831_v58, %v3613_v19  ;;  %v1644_v52 = vrot.slane %v1630_v55, %v3613_v19  ;;  %v1648_v10 = vcombine.low %v1562_v50, %v3761_v39  ;;  %v1649_v37 = vcombine.low %v1572_v15, %v1555_v30  ;;  %v3020_v55 = vld [vmem:[#allocation2 + $0x18] sm:$0xff]  }
 0x1b3   :  { %v1846_v20 = vrot.slane %v1832_v46, %v3613_v19  ;;  %v1879_v6 = vrot.slane %v1872_v45, %v3613_v19  ;;  %v1656_v9 = vrot.slane %v1646_v4, %v3613_v19  ;;  %v1663_v33 = vrot.slane %v1647_v26, %v3613_v19  ;;  %v3021_v45 = vld [vmem:[#allocation2 + $0x40] sm:$0xff]  }
 0x1b4   :  { %v1645_v56 = vcombine.low %v1637_v40, %v1644_v52  ;;  %v1670_v7 = vrot.slane %v1648_v10, %v3613_v19  ;;  %v1677_v18 = vrot.slane %v1649_v37, %v3613_v19  ;;  %v1571_v41 = vcombine.high %v1555_v30, %v1555_v30 }
 0x1b5   :  { %v1847_v25 = vcombine.low %v1839_v42, %v1846_v20  ;;  %v1887_v35 = vcombine.low %v1879_v6, %v1886_v29  ;;  %v1678_v17 = vcombine.low %v1656_v9, %v1663_v33  ;;  %v1573_v13 = vcombine.high %v1569_v43, %v1569_v43  ;;  %v3022_v20 = vld [vmem:[#allocation2 + $0x48] sm:$0xff]   ;;  %v3024_v33 = vld [vmem:[#allocation2 + $0x58] sm:$0xff]  }
 0x1b6   :  { %v1679_v49 = vcombine.low %v1670_v7, %v1677_v18  ;;  %v1596_v63 = vcombine.high %v3703_v23, %v3703_v23  ;;  %v1695_v61 = vcombine.low %v1569_v43, %v1571_v41  ;;  %v2058_v3 = vcombine.high %v3676_v53, %v3676_v53 }
 0x1b7   :  { %v1891_v50 = vpack.c.bf16 %v1847_v25, %v1798_v5  ;;  %v1892_v34 = vpack.c.bf16 %v1887_v35, %v1887_v35  ;;  %v1686_v1 = vrot.slane %v1678_v17, %v3613_v19  ;;  %v1696_v30 = vcombine.low %v1573_v13, %v3703_v23 }
 0x1b8   :  { %v1693_v12 = vrot.slane %v1679_v49, %v3613_v19  ;;  %v1697_v29 = vcombine.low %v3710_v24, %v1596_v63  ;;  %v1704_v36 = vrot.slane %v1695_v61, %v3613_v19  ;;  %v2065_v51 = vrot.slane %v2058_v3, %v3613_v19 }
 0x1b9   :  { %2927 = vmatprep.mubr.msk.bf16.mxu1 %vm1102_vm10, %v1891_v50  ;;  %v1711_v43 = vrot.slane %v1696_v30, %v3613_v19  ;;  %v2088_v53 = vcombine.low %v1614_v44, %v1621_v8  ;;  %v2089_v31 = vcombine.low %v1628_v2, %v1656_v9  ;;  %v2773_v54 = vcombine.high %v3717_v48, %v3722_v62  ;;  %v3019_v44 = vld [vmem:[#allocation2 + $0x10] sm:$0xff]  }
 0x1ba   :  { %2928 = vmatmul.mubr.msk.bf16.vlgmr.msra.gmra.mrb[8].mxu1 %vm1102_vm10, %v1892_v34  ;;  %v1694_v14 = vcombine.low %v1686_v1, %v1693_v12  ;;  %v1718_v23 = vrot.slane %v1697_v29, %v3613_v19  ;;  %v2072_v15 = vrot.slane %v2065_v51, %v3613_v19  ;;  %v2122_v8 = vcombine.low %v1677_v18, %v1704_v36  ;;  %v3023_v9 = vld [vmem:[#allocation2 + $0x50] sm:$0xff]  }
 0x1bb   :  { %2932 = vmatpush3.bf16.msra.mxu1 %v3584_v60  ;;  %v1719_v57 = vcombine.low %v1704_v36, %v1711_v43  ;;  %v2096_v16 = vrot.slane %v2088_v53, %v3613_v19  ;;  %v2103_v47 = vrot.slane %v2089_v31, %v3613_v19  ;;  %v2073_v48 = vcombine.high %v3695_v32, %v3695_v32 }
 0x1bc   :  { %v1738_v11 = vpack.c.bf16 %v1694_v14, %v1645_v56  ;;  %2933 = vmatprep.subr.bf16.mxu1 %v3018_v21  ;;  %v2106_v22 = vcombine.low %v2072_v15, %v3761_v39  ;;  %v1733_v27 = vrot.slane %v1718_v23, %v3613_v19  ;;  %v2113_v60 = vrot.slane %v2773_v54, %v3613_v19 }
 0x1bd   :  { %v1726_v2 = vrot.slane %v1719_v57, %v3613_v19  ;;  %v2104_v0 = vcombine.low %v2096_v16, %v2103_v47  ;;  %v2146_v59 = vcombine.low %v1711_v43, %v1718_v23  ;;  %v1749_v39 = vcombine.high %v3710_v24, %v3710_v24 }
 0x1be   :  { %2939 = vmatprep.mubr.msk.bf16.mxu1 %vm1102_vm10, %v1738_v11  ;;  %v2120_v62 = vrot.slane %v2106_v22, %v3613_v19  ;;  %v2080_v58 = vrot.slane %v2073_v48, %v3613_v19  ;;  %v2136_v26 = vrot.slane %v2122_v8, %v3613_v19  ;;  %v2283_v11 = vld [vmem:[%s3912_s5] sm:$0x1]  ;;  %s3084_s5 = smov [#allocation5]  }
 0x1bf   :  { %2934 = vmatpush3.bf16.msra.mxu1 %v3018_v21  ;;  %v1734_v28 = vcombine.low %v1726_v2, %v1733_v27  ;;  %v2153_v24 = vrot.slane %v2146_v59, %v3613_v19  ;;  %v2287_v8 = vld [vmem:[%s3913_s6] sm:$0x1]  ;;  %s2707_s6 = sshll.u32 %s3084_s5, 4  ;;  %s2708_s6 = int_to_ptr.vmem [resolvable:$true] %s2707_s6 }
 0x1c0   :  { %2935 = vmatprep.subr.bf16.mxu1 %v3019_v44  ;;  %v2121_v4 = vcombine.low %v2113_v60, %v2120_v62  ;;  %v2087_v32 = vrot.slane %v2080_v58, %v3613_v19  ;;  %s3051_s13 = scalar_lea.vmem %s2708_s6, 256  ;;  %p3056_p9 = scmp.lt.s32.totalorder %s2708_s6, %s2708_s6 }
 0x1c1   :  { %v1739_v37 = vpack.c.bf16 %v1734_v28, %v1734_v28  ;;  %p3052_p8 = scmp.ne.s32.totalorder %s2708_s6, %s3051_s13  ;;  %p3057_p10 = scmp.lt.s32.totalorder %s3051_s13, %s3051_s13 }
 0x1c2   :  { %v2129_v5 = vrot.slane %v2121_v4, %v3613_v19  ;;  %v2138_v46 = vcombine.low %v1749_v39, %v2087_v32 }
 0x1c3   :  { %2936 = vmatpush3.bf16.msra.mxu1 %v3019_v44  ;;  %p3058_p11 = por %p3057_p10, %p3056_p9 }
 0x1c4   :  { %2937 = vmatprep.subr.bf16.mxu1 %v3020_v55  ;;  %v2137_v40 = vcombine.low %v2129_v5, %v2136_v26  ;;  %v2145_v42 = vrot.slane %v2138_v46, %v3613_v19 }
 0x1c5   :  { %p3059_p12 = pnand %p3058_p11, %p3052_p8 }
 0x1c6   :  { %v2165_v52 = vpack.c.bf16 %v2137_v40, %v2104_v0  ;;  %v2160_v10 = vrot.slane %v2145_v42, %v3613_v19 }
 0x1c7   :  { %2938 = vmatpush3.bf16.msra.mxu1 %v3020_v55 }
 0x1c8   :  { %2943 = vmatprep.subr.bf16.mxu1 %v3021_v45  ;;  %v2161_v6 = vcombine.low %v2153_v24, %v2160_v10 }
 0x1ca   :  { %2940 = vmatmul.mubr.msk.bf16.vlgmr.msra.gmra.mrb[8].mxu1 %vm1102_vm10, %v1739_v37  ;;  %v2166_v56 = vpack.c.bf16 %v2161_v6, %v2161_v6 }
 0x1cb   :  { %2944 = vmatpush3.bf16.msra.mxu1 %v3021_v45  ;;  %2951 = vmatprep.mubr.msk.bf16.mxu1 %vm1102_vm10, %v2165_v52 }
 0x1cc   :  { %2945 = vmatprep.subr.bf16.mxu1 %v3022_v20 }
 0x1cf   :  { %2946 = vmatpush3.bf16.msra.mxu1 %v3022_v20 }
 0x1d0   :  { %2947 = vmatprep.subr.bf16.mxu1 %v3023_v9 }
 0x1d3   :  { %2948 = vmatpush3.bf16.msra.mxu1 %v3023_v9 }
 0x1d4   :  { %2949 = vmatprep.subr.bf16.mxu1 %v3024_v33 }
 0x1d7   :  { %2950 = vmatpush3.bf16.msra.mxu1 %v3024_v33 }
 0x1da   :  { %2952 = vmatmul.mubr.msk.bf16.vlgmr.msra.gmra.mrb[8].mxu1 %vm1102_vm10, %v2166_v56 }
 0x2ad   :  { %v2953_v7 = vpop.f32.mrb[8].mxu1 }
 0x2ae   :  { %v2240_v18 = vpop.f32.mrb[9].mxu1  ;;  %v2270_v25 = vmul.f32 %v2953_v7, %v2953_v7  ;;  %v2259_v63 = vsel %vm2258_vm4, %v2953_v7, 0.0 }
 0x2af   :  { %v2954_v41 = vpop.f32.mrb[10].mxu1  ;;  %v2268_v17 = vmul.f32 %v2240_v18, %v2240_v18 }
 0x2b0   :  { %v2243_v35 = vpop.f32.mrb[11].mxu1  ;;  %v2272_v50 = vsel %vm2258_vm4, %v2270_v25, 0.0 }
 0x2b1   :  { %v2257_v13 = vadd.f32 %v2243_v35, %v2240_v18  ;;  %v2269_v49 = vmul.f32 %v2243_v35, %v2243_v35 }
 0x2b3   :  { %v2260_v61 = vadd.f32 %v2259_v63, %v2257_v13  ;;  %v2271_v3 = vadd.f32 %v2269_v49, %v2268_v17 }
 0x2b5   :  { %v2261_v34 = vrot.slane %v2260_v61, 4  ;;  %v2273_v1 = vadd.f32 %v2272_v50, %v2271_v3 }
 0x2b7   :  { %v2262_v30 = vadd.f32 %v2261_v34, %v2260_v61  ;;  %v2274_v12 = vrot.slane %v2273_v1, 4 }
 0x2b9   :  { %v2263_v21 = vrot.slane %v2262_v30, 2  ;;  %v2275_v29 = vadd.f32 %v2274_v12, %v2273_v1 }
 0x2bb   :  { %v2264_v36 = vadd.f32 %v2263_v21, %v2262_v30  ;;  %v2276_v51 = vrot.slane %v2275_v29, 2 }
 0x2bd   :  { %v2265_v43 = vrot.slane %v2264_v36, 1  ;;  %v2277_v53 = vadd.f32 %v2276_v51, %v2275_v29 }
 0x2bf   :  { %v2266_v31 = vadd.f32 %v2265_v43, %v2264_v36  ;;  %v2278_v14 = vrot.slane %v2277_v53, 1 }
 0x2c1   :  { %v2267_v23 = vmul.f32 0.045454547, %v2266_v31  ;;  %v2279_v15 = vadd.f32 %v2278_v14, %v2277_v53 }
 0x2c3   :  { %v2280_v54 = vmul.f32 0.045454547, %v2279_v15  ;;  %v2281_v57 = vmul.f32 %v2267_v23, %v2267_v23 }
 0x2c5   :  { %v2282_v16 = vsub.f32 %v2280_v54, %v2281_v57 }
 0x2c7   :  { %v2284_v47 = vadd.f32 1e-05, %v2282_v16 }
 0x2c9   :  { %3027 = vrsqrt.f32 %v2284_v47 }
 0x2d3   :  { %v3028_v44 = vpop.eup %3027 }
 0x2d4   :  { %v2286_v22 = vmul.f32 %v3028_v44, %v2283_v11 }
 0x2d6   :  { %v2288_v2 = vmul.f32 %v2286_v22, %v2267_v23  ;;  %v2294_v27 = vrot.slane %v2286_v22, %v3603_v38 }
 0x2d8   :  { %v2289_v0 = vsub.f32 %v2287_v8, %v2288_v2  ;;  %v2296_v48 = vmul.f32 %v2294_v27, %v2240_v18  ;;  %v2297_v60 = vmul.f32 %v2294_v27, %v2243_v35  ;;  %v2298_v62 = vmul.f32 %v2953_v7, %v2294_v27 }
 0x2da   :  { %v2303_v59 = vrot.slane %v2289_v0, %v3603_v38 }
 0x2dc   :  { %v2305_v28 = vadd.f32 %v2303_v59, %v2296_v48  ;;  %v2306_v39 = vadd.f32 %v2303_v59, %v2297_v60  ;;  %v2307_v58 = vadd.f32 %v2303_v59, %v2298_v62 }
 0x2de   :  { %v2308_v55 = vmax.f32 %v2305_v28, 0.0  ;;  %v2309_v4 = vmax.f32 %v2306_v39, 0.0  ;;  %v2310_v26 = vmax.f32 %v2307_v58, 0.0 }
 0x2e0   :  { %v2314_v32 = vcombine.high %v2308_v55, %v2308_v55  ;;  %v2321_v5 = vrot.slane %v2308_v55, %v3613_v19  ;;  %v2363_v46 = vcombine.high %v2309_v4, %v2309_v4  ;;  %v2370_v45 = vrot.slane %v2309_v4, %v3613_v19 }
 0x2e1   :  { %v2411_v40 = vcombine.high %v2310_v26, %v2310_v26  ;;  %v2418_v42 = vrot.slane %v2310_v26, %v3613_v19 }
 0x2e2   :  { %v2328_v24 = vrot.slane %v2314_v32, %v3613_v19  ;;  %v2329_v52 = vcombine.high %v2321_v5, %v2321_v5  ;;  %v2337_v38 = vrot.slane %v2321_v5, %v3613_v19  ;;  %v2377_v10 = vrot.slane %v2363_v46, %v3613_v19 }
 0x2e3   :  { %v2378_v37 = vcombine.high %v2370_v45, %v2370_v45  ;;  %v2386_v20 = vrot.slane %v2370_v45, %v3613_v19  ;;  %v2425_v6 = vrot.slane %v2411_v40, %v3613_v19  ;;  %v2426_v9 = vcombine.high %v2418_v42, %v2418_v42 }
 0x2e4   :  { %v2330_v33 = vcombine.high %v2328_v24, %v2328_v24  ;;  %v2344_v56 = vrot.slane %v2328_v24, %v3613_v19  ;;  %v2351_v7 = vrot.slane %v2329_v52, %v3613_v19  ;;  %v2379_v18 = vcombine.high %v2377_v10, %v2377_v10 }
 0x2e5   :  { %v2393_v41 = vrot.slane %v2377_v10, %v3613_v19  ;;  %v2400_v25 = vrot.slane %v2378_v37, %v3613_v19  ;;  %v2433_v35 = vrot.slane %v2418_v42, %v3613_v19  ;;  %v2440_v17 = vrot.slane %v2425_v6, %v3613_v19 }
 0x2e6   :  { %v2358_v13 = vrot.slane %v2330_v33, %v3613_v19  ;;  %v2407_v49 = vrot.slane %v2379_v18, %v3613_v19  ;;  %v2447_v63 = vrot.slane %v2426_v9, %v3613_v19  ;;  %v2450_v61 = vcombine.low %v2337_v38, %v2351_v7 }
 0x2e7   :  { %v2408_v3 = vcombine.high %v2393_v41, %v2393_v41  ;;  %v2409_v50 = vcombine.high %v2400_v25, %v2400_v25  ;;  %v2448_v34 = vcombine.high %v2433_v35, %v2433_v35  ;;  %v2780_v1 = vcombine.high %v2337_v38, %v2351_v7 }
 0x2e8   :  { %v2410_v30 = vcombine.high %v2407_v49, %v2407_v49  ;;  %v2449_v12 = vcombine.high %v2447_v63, %v2447_v63  ;;  %v2457_v21 = vrot.slane %v2450_v61, %v3613_v19  ;;  %v2480_v29 = vcombine.low %v2344_v56, %v2358_v13 }
 0x2e9   :  { %v2472_v36 = vrot.slane %v2780_v1, %v3613_v19  ;;  %v2781_v51 = vcombine.high %v2344_v56, %v2358_v13  ;;  %v2510_v43 = vcombine.low %v2386_v20, %v2400_v25  ;;  %v2525_v53 = vcombine.low %v2409_v50, %v2393_v41 }
 0x2ea   :  { %v2464_v31 = vrot.slane %v2457_v21, %v3613_v19  ;;  %v2487_v14 = vrot.slane %v2480_v29, %v3613_v19  ;;  %v2540_v23 = vcombine.low %v2407_v49, %v2408_v3  ;;  %v2555_v15 = vcombine.low %v2410_v30, %v2433_v35 }
 0x2eb   :  { %v2479_v54 = vrot.slane %v2472_v36, %v3613_v19  ;;  %v2502_v57 = vrot.slane %v2781_v51, %v3613_v19  ;;  %v2517_v16 = vrot.slane %v2510_v43, %v3613_v19  ;;  %v2532_v47 = vrot.slane %v2525_v53, %v3613_v19 }
 0x2ec   :  { %v2494_v11 = vrot.slane %v2487_v14, %v3613_v19  ;;  %v2547_v44 = vrot.slane %v2540_v23, %v3613_v19  ;;  %v2562_v22 = vrot.slane %v2555_v15, %v3613_v19  ;;  %v2570_v8 = vcombine.low %v2447_v63, %v2448_v34 }
 0x2ed   :  { %v2509_v2 = vrot.slane %v2502_v57, %v3613_v19  ;;  %v2524_v27 = vrot.slane %v2517_v16, %v3613_v19  ;;  %v2539_v0 = vrot.slane %v2532_v47, %v3613_v19  ;;  %v2585_v48 = vcombine.low %v2449_v12, %v2440_v17 }
 0x2ee   :  { %v2554_v60 = vrot.slane %v2547_v44, %v3613_v19  ;;  %v2569_v62 = vrot.slane %v2562_v22, %v3613_v19  ;;  %v2610_v59 = vsel %vm1443_vm3, %v2464_v31, -inf  ;;  %v2617_v28 = vsel %vm1443_vm3, %v2479_v54, -inf }
 0x2ef   :  { %v2611_v39 = vrot.slane %v2610_v59, 4  ;;  %v2618_v58 = vrot.slane %v2617_v28, 4  ;;  %v2624_v55 = vsel %vm1443_vm3, %v2494_v11, -inf  ;;  %v2631_v4 = vsel %vm1443_vm3, %v2509_v2, -inf }
 0x2f0   :  { %v2625_v26 = vrot.slane %v2624_v55, 4  ;;  %v2632_v32 = vrot.slane %v2631_v4, 4  ;;  %v2638_v5 = vsel %vm1443_vm3, %v2524_v27, -inf  ;;  %v2645_v46 = vsel %vm1443_vm3, %v2539_v0, -inf }
 0x2f1   :  { %v2612_v45 = vmax.f32 %v2610_v59, %v2611_v39  ;;  %v2619_v40 = vmax.f32 %v2617_v28, %v2618_v58  ;;  %v2639_v42 = vrot.slane %v2638_v5, 4  ;;  %v2646_v24 = vrot.slane %v2645_v46, 4 }
 0x2f2   :  { %v2626_v52 = vmax.f32 %v2624_v55, %v2625_v26  ;;  %v2652_v38 = vsel %vm1443_vm3, %v2554_v60, -inf  ;;  %v2577_v10 = vrot.slane %v2570_v8, %v3613_v19  ;;  %v2592_v37 = vrot.slane %v2585_v48, %v3613_v19 }
 0x2f3   :  { %v2613_v20 = vrot.slane %v2612_v45, 2  ;;  %v2620_v6 = vrot.slane %v2619_v40, 2  ;;  %v2640_v9 = vmax.f32 %v2638_v5, %v2639_v42  ;;  %v2647_v33 = vmax.f32 %v2645_v46, %v2646_v24 }
 0x2f4   :  { %v2653_v56 = vrot.slane %v2652_v38, 4  ;;  %v2584_v7 = vrot.slane %v2577_v10, %v3613_v19  ;;  %v2599_v18 = vrot.slane %v2592_v37, %v3613_v19  ;;  %v2627_v41 = vrot.slane %v2626_v52, 2 }
 0x2f5   :  { %v2614_v25 = vmax.f32 %v2612_v45, %v2613_v20  ;;  %v2621_v35 = vmax.f32 %v2619_v40, %v2620_v6  ;;  %v2641_v17 = vrot.slane %v2640_v9, 2  ;;  %v2648_v13 = vrot.slane %v2647_v33, 2 }
 0x2f6   :  { %v2628_v49 = vmax.f32 %v2626_v52, %v2627_v41  ;;  %v2633_v63 = vmax.f32 %v2631_v4, %v2632_v32  ;;  %v2654_v61 = vmax.f32 %v2652_v38, %v2653_v56  ;;  %v2659_v3 = vsel %vm1443_vm3, %v2569_v62, -inf }
 0x2f7   :  { %v2642_v50 = vmax.f32 %v2640_v9, %v2641_v17  ;;  %v2615_v34 = vrot.slane %v2614_v25, 1  ;;  %v2622_v1 = vrot.slane %v2621_v35, 1  ;;  %v2649_v30 = vmax.f32 %v2647_v33, %v2648_v13 }
 0x2f8   :  { %v2629_v12 = vrot.slane %v2628_v49, 1  ;;  %v2634_v21 = vrot.slane %v2633_v63, 2  ;;  %v2655_v29 = vrot.slane %v2654_v61, 2  ;;  %v2660_v36 = vrot.slane %v2659_v3, 4 }
 0x2f9   :  { %v2616_v51 = vmax.f32 %v2614_v25, %v2615_v34  ;;  %v2623_v19 = vmax.f32 %v2621_v35, %v2622_v1  ;;  %v2643_v14 = vrot.slane %v2642_v50, 1  ;;  %v2666_v15 = vsel %vm1443_vm3, %v2584_v7, -inf }
 0x2fa   :  { %v2635_v43 = vmax.f32 %v2633_v63, %v2634_v21  ;;  %v2656_v53 = vmax.f32 %v2654_v61, %v2655_v29  ;;  %v2661_v31 = vmax.f32 %v2659_v3, %v2660_v36  ;;  %v2630_v23 = vmax.f32 %v2628_v49, %v2629_v12 }
 0x2fb   :  { %v2673_v54 = vsel %vm1443_vm3, %v2599_v18, -inf  ;;  %v2650_v16 = vrot.slane %v2649_v30, 1  ;;  %v2667_v11 = vrot.slane %v2666_v15, 4  ;;  %v2690_v8 = vsel %vm1429_vm13, %v2623_v19, %v2616_v51 }
 0x2fc   :  { %v2636_v57 = vrot.slane %v2635_v43, 1  ;;  %v2662_v47 = vrot.slane %v2661_v31, 2  ;;  %v2657_v44 = vrot.slane %v2656_v53, 1  ;;  %v2674_v22 = vrot.slane %v2673_v54, 4 }
 0x2fd   :  { %v2668_v0 = vmax.f32 %v2666_v15, %v2667_v11  ;;  %v2644_v48 = vmax.f32 %v2642_v50, %v2643_v14  ;;  %v2691_v62 = vsel %vm146_vm2, %v2630_v23, %v2690_v8  ;;  %v2651_v59 = vmax.f32 %v2649_v30, %v2650_v16 }
 0x2fe   :  { %v2637_v2 = vmax.f32 %v2635_v43, %v2636_v57  ;;  %v2663_v27 = vmax.f32 %v2661_v31, %v2662_v47  ;;  %v2675_v60 = vmax.f32 %v2673_v54, %v2674_v22  ;;  %v2658_v55 = vmax.f32 %v2656_v53, %v2657_v44 }
 0x2ff   :  { %v2669_v39 = vrot.slane %v2668_v0, 2 }
 0x300   :  { %v2664_v28 = vrot.slane %v2663_v27, 1  ;;  %v2692_v58 = vsel %vm1421_vm15, %v2637_v2, %v2691_v62  ;;  %v2676_v4 = vrot.slane %v2675_v60, 2 }
 0x301   :  { %v2693_v26 = vsel %vm148_vm5, %v2644_v48, %v2692_v58  ;;  %v2670_v5 = vmax.f32 %v2668_v0, %v2669_v39 }
 0x302   :  { %v2665_v32 = vmax.f32 %v2663_v27, %v2664_v28  ;;  %v2694_v46 = vsel %vm1424_vm0, %v2651_v59, %v2693_v26  ;;  %v2677_v45 = vmax.f32 %v2675_v60, %v2676_v4 }
 0x303   :  { %v2695_v40 = vsel %vm150_vm7, %v2658_v55, %v2694_v46  ;;  %v2671_v42 = vrot.slane %v2670_v5, 1 }
 0x304   :  { %v2696_v24 = vsel %vm1427_vm1, %v2665_v32, %v2695_v40  ;;  %v2678_v52 = vrot.slane %v2677_v45, 1 }
 0x305   :  { %2700 = vst [vmem:[#allocation5] sm:$0xff] %v2696_v24  ;;  %v2672_v38 = vmax.f32 %v2670_v5, %v2671_v42 }
 0x306   :  { %v2679_v10 = vmax.f32 %v2677_v45, %v2678_v52 }
 0x308   :  { %v2697_v37 = vsel %vm1429_vm13, %v2679_v10, %v2672_v38 }
 0x309   :  { %2701 = vst [vmem:[#allocation5 + $0x8] sm:$0x3] %v2697_v37 }
 0x30a   :  { %3062 = shalt.err (!%p3059_p12)
}
 0x30b   :  { %s3063_s15 = scalar_lea.hbm %s3914_s7, 256 }
 0x30c   :  { %p3064_p13 = scmp.ne.s32.totalorder %s3914_s7, %s3063_s15  ;;  %p3067_p0 = scmp.lt.u32.totalorder %s3063_s15, %s3914_s7 }
 0x30e   :  { %p3069_p1 = pnand %p3067_p0, %p3064_p13 }
 0x310   :  { %3072 = shalt.err (!%p3069_p1)
}
 0x311   :  { %s3085_s20 = smov 128   ;;  %s3086_s21 = smov 8  }
 0x312   :  { %2713 = dma.vmem_to_hbm [thread:$0]  %s2708_s6, 256, %s3914_s7, [#allocation4], %s3085_s20, %s3085_s20, %s3086_s21  }
 0x313   :  { %3075 = dma.done.wait [#allocation4], 256  }
 0x314   :  { %3076 = vsyncadd [#allocation4], 4294967040 }
 0x315   :  { %2717 = vsyncpa [#allocation3], 1 }
 0x316   :  { %2718 = vsyncpa [#allocation4], 1 }

</bundles_post_ra>
